<compile_context>
chip_gen: v6e
topology: v6e:2x2x1
jax: 0.10.0
libtpu: 0.0.40
codegen_flags: <defaults>
</compile_context>

<pallas_src>
import math
import functools

import numpy as np
import jax
import jax.numpy as jnp
from jax.experimental import pallas as pl
from jax.experimental.pallas import tpu as pltpu


def mha_kernel(q_ref, c_ref, wk_ref, wv_ref, bk_ref, bv_ref, wo_ref, bo_ref,
               out_ref, k_scr, v_scr, *, num_heads):
    """One (batch, q-tile) grid step.

    q_ref : (1, H, TQ, hd) bf16       c_ref : (1, Lc, Din) bf16
    wk_ref/wv_ref : (H, Din, hd) bf16 (scale folded into wk)
    bk_ref/bv_ref : (H, 1, hd) f32    (scale folded into bk)
    wo_ref: (H, hd, E_pad) bf16       bo_ref: (1, E_pad) f32
    out_ref: (1, TQ, E_pad)
    k_scr/v_scr: (H, Lc, hd) bf16 VMEM scratch, persistent across q-tiles.
    """
    qt = pl.program_id(1)

    # --- KV projection: only on the first q-tile of each batch element; the
    # head-batched K/V stay resident in VMEM scratch for the remaining tiles.
    # NOTE: correctness relies on the t axis being sequential ("arbitrary").
    @pl.when(qt == 0)
    def _project_kv():
        c = c_ref[0]                                           # (Lc, Din) bf16
        cb = jnp.broadcast_to(c, (num_heads,) + c.shape)       # (H, Lc, Din): leading-dim bcast (cheap)
        k = jnp.einsum('hld,hdo->hlo', cb, wk_ref[...],
                       preferred_element_type=jnp.float32) + bk_ref[...]
        v = jnp.einsum('hld,hdo->hlo', cb, wv_ref[...],
                       preferred_element_type=jnp.float32) + bv_ref[...]
        k_scr[...] = k.astype(k_scr.dtype)
        v_scr[...] = v.astype(v_scr.dtype)

    q = q_ref[0]                                   # (H, TQ, hd) bf16; 1/sqrt(hd) already in K
    k = k_scr[...]                                 # (H, Lc, hd) bf16
    v = v_scr[...]                                 # (H, Lc, hd) bf16

    # Head-batched attention, f32 accumulation on the MXU.
    logits = jnp.einsum('hqd,hkd->hqk', q, k,
                        preferred_element_type=jnp.float32)    # (H, TQ, Lc) f32
    m = jnp.max(logits, axis=-1, keepdims=True)
    p = jnp.exp(logits - m)                                    # f32 EUP exp
    denom = jnp.sum(p, axis=-1, keepdims=True)                 # (H, TQ, 1) f32

    # Deferred normalization: PV matmul on unnormalized weights, then scale the
    # small (H, TQ, hd) result (Lc/hd fewer multiplies; exact reciprocal).
    vals = jnp.einsum('hqk,hkd->hqd', p.astype(v.dtype), v,
                      preferred_element_type=jnp.float32)      # (H, TQ, hd) f32
    vals = vals * pl.reciprocal(denom)                         # exact, tiny tensor

    # Output projection: per-head (TQ,hd)x(hd,E_pad) matmuls accumulated into a
    # single (TQ,E_pad) f32 tile (no (H,TQ,E) temp, no separate head-sum pass).
    out = None
    for h in range(num_heads):                                 # static unroll
        part = jnp.dot(vals[h].astype(wo_ref.dtype), wo_ref[h],
                       preferred_element_type=jnp.float32)
        out = part if out is None else out + part
    out_ref[0] = (out + bo_ref[...]).astype(out_ref.dtype)


def multihead_attention(q, c, w_kv, b_kv, w_o, b_o, *, num_heads, q_tile=None,
                        out_dtype=jnp.float32):
    """q: (B, Lq, E), c: (B, Lc, Din); weights already transposed to (in, out)."""
    B, Lq, E = q.shape
    _, Lc, Din = c.shape
    assert E % num_heads == 0
    H = num_heads
    hd = E // H
    scale = 1.0 / math.sqrt(hd)

    # ---- Parameter layout plumbing (one-time, f32, XLA side) ----
    # qkv_proj column order per head h is [k_h (hd cols), v_h (hd cols)].
    w_kv4 = w_kv.reshape(Din, H, 2, hd)
    # Fold the softmax scale into W_k / b_k (in f32, before the bf16 cast).
    wk = (jnp.transpose(w_kv4[:, :, 0, :], (1, 0, 2)) * scale).astype(jnp.bfloat16)  # (H, Din, hd)
    wv = jnp.transpose(w_kv4[:, :, 1, :], (1, 0, 2)).astype(jnp.bfloat16)            # (H, Din, hd)
    b_kv3 = b_kv.reshape(H, 2, hd)
    bk = (b_kv3[:, 0, :] * scale).reshape(H, 1, hd).astype(jnp.float32)
    bv = b_kv3[:, 1, :].reshape(H, 1, hd).astype(jnp.float32)

    # Pad output feature dim to a multiple of 128 lanes (unmasked vst stores).
    E_pad = ((E + 127) // 128) * 128
    wo_f = w_o if E_pad == E else jnp.pad(w_o, ((0, 0), (0, E_pad - E)))
    bo_f = b_o if E_pad == E else jnp.pad(b_o, (0, E_pad - E))
    wo = wo_f.reshape(H, hd, E_pad).astype(jnp.bfloat16)                              # (H, hd, E_pad)
    bo = bo_f.reshape(1, E_pad).astype(jnp.float32)

    # Activations: bf16 matmul operands, head-major q (layout plumbing).
    q4 = jnp.transpose(q.reshape(B, Lq, H, hd), (0, 2, 1, 3)).astype(jnp.bfloat16)
    c3 = c.astype(jnp.bfloat16)

    # Query tiling (multiple of 8 sublanes; lane dims stay full-array).
    if q_tile is None:
        q_tile = 128 if (Lq % 128 == 0) else Lq
    TQ = q_tile
    assert Lq % TQ == 0
    nqt = Lq // TQ

    kernel = functools.partial(mha_kernel, num_heads=H)

    def _nbytes(shape, dtype):
        return int(math.prod(shape)) * np.dtype(dtype).itemsize

    def _build(single_buffer):
        def _const_spec(shape, index_map):
            # Constant-index blocks are never re-fetched; single-buffer them.
            if single_buffer:
                return pl.BlockSpec(shape, index_map, pipeline_mode=pl.Buffered(1))
            return pl.BlockSpec(shape, index_map)

        cmult = 1 if single_buffer else 2
        pipe_bytes = (
            2 * _nbytes((1, H, TQ, hd), jnp.bfloat16)            # q (double-buffered)
            + 2 * _nbytes((1, TQ, E_pad), out_dtype)             # out (double-buffered)
            + cmult * (_nbytes((1, Lc, Din), jnp.bfloat16)
                       + 2 * _nbytes((H, Din, hd), jnp.bfloat16)
                       + 2 * _nbytes((H, 1, hd), jnp.float32)
                       + _nbytes((H, hd, E_pad), jnp.bfloat16)
                       + _nbytes((1, E_pad), jnp.float32)))
        scratch_bytes = 2 * _nbytes((H, Lc, hd), jnp.bfloat16)
        live_bytes = (2 * _nbytes((H, TQ, Lc), jnp.float32)      # logits, p
                      + _nbytes((H, TQ, hd), jnp.float32)        # vals
                      + _nbytes((TQ, E_pad), jnp.float32)        # output accumulator
                      + _nbytes((H, Lc, Din), jnp.bfloat16)      # broadcast c (t==0 only)
                      + 2 * _nbytes((H, Lc, hd), jnp.float32))   # K/V f32 temps (t==0 only)
        vmem_limit = int(1.25 * (pipe_bytes + scratch_bytes + live_bytes)) + (4 << 20)
        # Clamp to the real generation's VMEM (v7x = 64 MiB/TC, v5e/v6e = 128 MiB).
        try:
            cap = int(0.75 * pltpu.get_tpu_info().vmem_capacity_bytes)
        except Exception:
            cap = int(0.75 * (64 << 20))   # conservative fallback (v7x per-core VMEM)
        vmem_limit = max(8 << 20, min(vmem_limit, cap))

        return pl.pallas_call(
            kernel,
            out_shape=jax.ShapeDtypeStruct((B, Lq, E_pad), out_dtype),
            grid_spec=pltpu.PrefetchScalarGridSpec(
                num_scalar_prefetch=0,
                grid=(B, nqt),
                in_specs=[
                    pl.BlockSpec((1, H, TQ, hd), lambda b, t: (b, 0, t, 0)),   # q, head-major
                    _const_spec((1, Lc, Din), lambda b, t: (b, 0, 0)),         # context c
                    _const_spec((H, Din, hd), lambda b, t: (0, 0, 0)),         # W_k (scaled)
                    _const_spec((H, Din, hd), lambda b, t: (0, 0, 0)),         # W_v
                    _const_spec((H, 1, hd), lambda b, t: (0, 0, 0)),           # b_k (scaled)
                    _const_spec((H, 1, hd), lambda b, t: (0, 0, 0)),           # b_v
                    _const_spec((H, hd, E_pad), lambda b, t: (0, 0, 0)),       # W_o
                    _const_spec((1, E_pad), lambda b, t: (0, 0)),              # b_o
                ],
                out_specs=pl.BlockSpec((1, TQ, E_pad), lambda b, t: (b, t, 0)),
                scratch_shapes=[
                    pltpu.VMEM((H, Lc, hd), jnp.bfloat16),   # K scratch (per batch element)
                    pltpu.VMEM((H, Lc, hd), jnp.bfloat16),   # V scratch
                ],
            ),
            compiler_params=pltpu.CompilerParams(
                # The t (q-tile) axis MUST stay "arbitrary"/sequential: the KV
                # scratch filled at t==0 is reused by the remaining tiles of the
                # same batch element.  Only the batch axis may be 'parallel'
                # (megacore sharding of b keeps per-core t sequential, so the
                # qt==0 gate stays valid).
                dimension_semantics=("parallel", "arbitrary"),
                vmem_limit_bytes=vmem_limit,
            ),
        )

    args = (q4, c3, wk, wv, bk, bv, wo, bo)
    single_buffer_ok = hasattr(pl, "Buffered")
    try:
        out_full = _build(single_buffer_ok)(*args)
    except Exception:
        if not single_buffer_ok:
            raise
        # Fallback: default double-buffering if Buffered(1) is rejected.
        out_full = _build(False)(*args)

    return out_full[..., :E] if E_pad != E else out_full


def xavier_uniform(key, out_features, in_features):
    # matches nn.init.xavier_uniform_ on a torch Linear weight (out, in)
    bound = math.sqrt(6.0 / (in_features + out_features))
    return jax.random.uniform(key, (out_features, in_features),
                              minval=-bound, maxval=bound, dtype=jnp.float32)


def reference_forward(q, c, w_kv_t, b_kv, w_o_t, b_o, num_heads):
    """Pure-JAX f32 replica of the PyTorch forward (mask=None)."""
    B, Lq, E = q.shape
    Lc = c.shape[1]
    hd = E // num_heads
    kv = jnp.einsum('bld,de->ble', c, w_kv_t) + b_kv          # (B, Lc, 2E)
    kv = kv.reshape(B, Lc, num_heads, 2 * hd).transpose(0, 2, 1, 3)
    k, v = kv[..., :hd], kv[..., hd:]
    qh = q.reshape(B, Lq, num_heads, hd).transpose(0, 2, 1, 3)
    logits = jnp.einsum('bhqd,bhkd->bhqk', qh, k) / math.sqrt(hd)
    attn = jax.nn.softmax(logits, axis=-1)
    vals = jnp.einsum('bhqk,bhkd->bhqd', attn, v)
    vals = vals.transpose(0, 2, 1, 3).reshape(B, Lq, E)
    return jnp.einsum('bld,de->ble', vals, w_o_t) + b_o


if __name__ == "__main__":
    # Small, module-consistent shapes.
    batch = 2
    seq = 8          # Lq == Lc
    input_dim = 16   # feature dim of context c
    embed_dim = 32
    num_heads = 4

    key = jax.random.PRNGKey(0)
    k_q, k_c, k_wkv, k_wo = jax.random.split(key, 4)

    q = jax.random.normal(k_q, (batch, seq, embed_dim), dtype=jnp.float32)
    c = jax.random.normal(k_c, (batch, seq, input_dim), dtype=jnp.float32)

    # Parameters: deterministic xavier-uniform weights, zero biases
    # (torch Linear stores weight as (out, in); transpose to (in, out) here).
    w_kv_torch = xavier_uniform(k_wkv, 2 * embed_dim, input_dim)   # (2E, Din)
    w_o_torch = xavier_uniform(k_wo, embed_dim, embed_dim)         # (E, E)
    b_kv = jnp.zeros((2 * embed_dim,), jnp.float32)
    b_o = jnp.zeros((embed_dim,), jnp.float32)

    w_kv_t = w_kv_torch.T   # (Din, 2E)
    w_o_t = w_o_torch.T     # (E, E)

    out = multihead_attention(q, c, w_kv_t, b_kv, w_o_t, b_o, num_heads=num_heads)
    out = jax.block_until_ready(out)

    ref = reference_forward(q, c, w_kv_t, b_kv, w_o_t, b_o, num_heads)
    assert out.shape == (batch, seq, embed_dim)
    # bf16 matmul operands -> loosened tolerance vs f32 reference.
    assert jnp.allclose(out, ref, atol=3e-2, rtol=3e-2), \
        f"max abs err {float(jnp.max(jnp.abs(out - ref)))}"

    print("KERNEL_OK")
</pallas_src>

<mosaic_0001>
module attributes {stable_mosaic.version = 11 : i64} {
  func.func @mha_kernel(%arg0: i32, %arg1: i32, %arg2: memref<1x4x8x8xbf16, #tpu.memory_space<vmem>>, %arg3: memref<1x8x16xbf16, #tpu.memory_space<vmem>>, %arg4: memref<4x16x8xbf16, #tpu.memory_space<vmem>>, %arg5: memref<4x16x8xbf16, #tpu.memory_space<vmem>>, %arg6: memref<4x1x8xf32, #tpu.memory_space<vmem>>, %arg7: memref<4x1x8xf32, #tpu.memory_space<vmem>>, %arg8: memref<4x8x128xbf16, #tpu.memory_space<vmem>>, %arg9: memref<1x128xf32, #tpu.memory_space<vmem>>, %arg10: memref<1x8x128xf32, #tpu.memory_space<vmem>>, %arg11: memref<4x8x8xbf16, #tpu.memory_space<vmem>>, %arg12: memref<4x8x8xbf16, #tpu.memory_space<vmem>>) attributes {dimension_semantics = [#tpu.dimension_semantics<parallel>, #tpu.dimension_semantics<arbitrary>], iteration_bounds = array<i64: 2, 1>, scalar_prefetch = 0 : i64, scratch_operands = 2 : i64, tpu.core_type = #tpu.core_type<tc>, window_params = [{transform_indices = @transform_0, window_bounds = array<i64: 1, 4, 8, 8>}, {pipeline_mode = #tpu.pipeline_mode<synchronous>, transform_indices = @transform_1, window_bounds = array<i64: 1, 8, 16>}, {pipeline_mode = #tpu.pipeline_mode<synchronous>, transform_indices = @transform_2, window_bounds = array<i64: 4, 16, 8>}, {pipeline_mode = #tpu.pipeline_mode<synchronous>, transform_indices = @transform_3, window_bounds = array<i64: 4, 16, 8>}, {pipeline_mode = #tpu.pipeline_mode<synchronous>, transform_indices = @transform_4, window_bounds = array<i64: 4, 1, 8>}, {pipeline_mode = #tpu.pipeline_mode<synchronous>, transform_indices = @transform_5, window_bounds = array<i64: 4, 1, 8>}, {pipeline_mode = #tpu.pipeline_mode<synchronous>, transform_indices = @transform_6, window_bounds = array<i64: 4, 8, 128>}, {pipeline_mode = #tpu.pipeline_mode<synchronous>, transform_indices = @transform_7, window_bounds = array<i64: 1, 128>}, {transform_indices = @transform_8, window_bounds = array<i64: 1, 8, 128>}]} {
    %c0_i32 = arith.constant 0 : i32
    %0 = arith.cmpi eq, %arg1, %c0_i32 : i32
    %1 = arith.extui %0 : i1 to i32
    %c0_i32_0 = arith.constant 0 : i32
    %2 = arith.cmpi ne, %1, %c0_i32_0 : i32
    scf.if %2 {
      %c0_31 = arith.constant 0 : index
      %c0_32 = arith.constant 0 : index
      %c0_33 = arith.constant 0 : index
      %53 = vector.load %arg3[%c0_31, %c0_32, %c0_33] : memref<1x8x16xbf16, #tpu.memory_space<vmem>>, vector<1x8x16xbf16>
      %54 = vector.shape_cast %53 : vector<1x8x16xbf16> to vector<8x16xbf16>
      %55 = vector.shape_cast %54 : vector<8x16xbf16> to vector<1x8x16xbf16>
      %56 = vector.broadcast %55 : vector<1x8x16xbf16> to vector<4x8x16xbf16>
      %c0_34 = arith.constant 0 : index
      %c0_35 = arith.constant 0 : index
      %c0_36 = arith.constant 0 : index
      %57 = vector.load %arg4[%c0_34, %c0_35, %c0_36] : memref<4x16x8xbf16, #tpu.memory_space<vmem>>, vector<4x16x8xbf16>
      "tpu.trace_start"() <{level = 10 : i32, message = "hld,hdo->hlo"}> : () -> ()
      %cst_37 = arith.constant dense<0.000000e+00> : vector<4x8x8xf32>
      %58 = tpu.matmul %56, %57, %cst_37 {dimension_numbers = #tpu.dot_dimension_numbers<[2], [1], [1], [2], [0, 0, 0, 1, 1, 2], [0], [0]>} : vector<4x8x16xbf16>, vector<4x16x8xbf16>, vector<4x8x8xf32> -> vector<4x8x8xf32>
      "tpu.trace_stop"() : () -> ()
      %c0_38 = arith.constant 0 : index
      %c0_39 = arith.constant 0 : index
      %c0_40 = arith.constant 0 : index
      %59 = vector.load %arg6[%c0_38, %c0_39, %c0_40] : memref<4x1x8xf32, #tpu.memory_space<vmem>>, vector<4x1x8xf32>
      %60 = vector.broadcast %59 : vector<4x1x8xf32> to vector<4x8x8xf32>
      %61 = arith.addf %58, %60 : vector<4x8x8xf32>
      %c0_41 = arith.constant 0 : index
      %c0_42 = arith.constant 0 : index
      %c0_43 = arith.constant 0 : index
      %62 = vector.load %arg5[%c0_41, %c0_42, %c0_43] : memref<4x16x8xbf16, #tpu.memory_space<vmem>>, vector<4x16x8xbf16>
      "tpu.trace_start"() <{level = 10 : i32, message = "hld,hdo->hlo"}> : () -> ()
      %cst_44 = arith.constant dense<0.000000e+00> : vector<4x8x8xf32>
      %63 = tpu.matmul %56, %62, %cst_44 {dimension_numbers = #tpu.dot_dimension_numbers<[2], [1], [1], [2], [0, 0, 0, 1, 1, 2], [0], [0]>} : vector<4x8x16xbf16>, vector<4x16x8xbf16>, vector<4x8x8xf32> -> vector<4x8x8xf32>
      "tpu.trace_stop"() : () -> ()
      %c0_45 = arith.constant 0 : index
      %c0_46 = arith.constant 0 : index
      %c0_47 = arith.constant 0 : index
      %64 = vector.load %arg7[%c0_45, %c0_46, %c0_47] : memref<4x1x8xf32, #tpu.memory_space<vmem>>, vector<4x1x8xf32>
      %65 = vector.broadcast %64 : vector<4x1x8xf32> to vector<4x8x8xf32>
      %66 = arith.addf %63, %65 : vector<4x8x8xf32>
      %67 = arith.truncf %61 : vector<4x8x8xf32> to vector<4x8x8xbf16>
      %c0_48 = arith.constant 0 : index
      %c0_49 = arith.constant 0 : index
      %c0_50 = arith.constant 0 : index
      %68 = vector.load %arg11[%c0_48, %c0_49, %c0_50] : memref<4x8x8xbf16, #tpu.memory_space<vmem>>, vector<4x8x8xbf16>
      tpu.vector_store %arg11[%c0_48, %c0_49, %c0_50], %67 {strides = array<i32>} : memref<4x8x8xbf16, #tpu.memory_space<vmem>>, vector<4x8x8xbf16>,
      %69 = arith.truncf %66 : vector<4x8x8xf32> to vector<4x8x8xbf16>
      %c0_51 = arith.constant 0 : index
      %c0_52 = arith.constant 0 : index
      %c0_53 = arith.constant 0 : index
      %70 = vector.load %arg12[%c0_51, %c0_52, %c0_53] : memref<4x8x8xbf16, #tpu.memory_space<vmem>>, vector<4x8x8xbf16>
      tpu.vector_store %arg12[%c0_51, %c0_52, %c0_53], %69 {strides = array<i32>} : memref<4x8x8xbf16, #tpu.memory_space<vmem>>, vector<4x8x8xbf16>,
    } else {
    }
    %c0 = arith.constant 0 : index
    %c0_1 = arith.constant 0 : index
    %c0_2 = arith.constant 0 : index
    %c0_3 = arith.constant 0 : index
    %3 = vector.load %arg2[%c0, %c0_1, %c0_2, %c0_3] : memref<1x4x8x8xbf16, #tpu.memory_space<vmem>>, vector<1x4x8x8xbf16>
    %4 = vector.shape_cast %3 : vector<1x4x8x8xbf16> to vector<4x8x8xbf16>
    %c0_4 = arith.constant 0 : index
    %c0_5 = arith.constant 0 : index
    %c0_6 = arith.constant 0 : index
    %5 = vector.load %arg11[%c0_4, %c0_5, %c0_6] : memref<4x8x8xbf16, #tpu.memory_space<vmem>>, vector<4x8x8xbf16>
    %c0_7 = arith.constant 0 : index
    %c0_8 = arith.constant 0 : index
    %c0_9 = arith.constant 0 : index
    %6 = vector.load %arg12[%c0_7, %c0_8, %c0_9] : memref<4x8x8xbf16, #tpu.memory_space<vmem>>, vector<4x8x8xbf16>
    "tpu.trace_start"() <{level = 10 : i32, message = "hqd,hkd->hqk"}> : () -> ()
    %cst = arith.constant dense<0.000000e+00> : vector<4x8x8xf32>
    %7 = tpu.matmul %4, %5, %cst {dimension_numbers = #tpu.dot_dimension_numbers<[2], [2], [1], [1], [0, 0, 0, 1, 1, 1], [0], [0]>} : vector<4x8x8xbf16>, vector<4x8x8xbf16>, vector<4x8x8xf32> -> vector<4x8x8xf32>
    "tpu.trace_stop"() : () -> ()
    %cst_10 = arith.constant dense<0xFF800000> : vector<4x8xf32>
    %8 = vector.multi_reduction <maximumf>, %7, %cst_10 [2] : vector<4x8x8xf32> to vector<4x8xf32>
    %9 = vector.shape_cast %8 : vector<4x8xf32> to vector<4x8x1xf32>
    %10 = vector.broadcast %9 : vector<4x8x1xf32> to vector<4x8x8xf32>
    %11 = arith.subf %7, %10 : vector<4x8x8xf32>
    %12 = math.exp %11 : vector<4x8x8xf32>
    %cst_11 = arith.constant dense<0.000000e+00> : vector<4x8xf32>
    %13 = vector.multi_reduction <add>, %12, %cst_11 [2] : vector<4x8x8xf32> to vector<4x8xf32>
    %14 = vector.shape_cast %13 : vector<4x8xf32> to vector<4x8x1xf32>
    %15 = arith.truncf %12 : vector<4x8x8xf32> to vector<4x8x8xbf16>
    "tpu.trace_start"() <{level = 10 : i32, message = "hqk,hkd->hqd"}> : () -> ()
    %cst_12 = arith.constant dense<0.000000e+00> : vector<4x8x8xf32>
    %16 = tpu.matmul %15, %6, %cst_12 {dimension_numbers = #tpu.dot_dimension_numbers<[2], [1], [1], [2], [0, 0, 0, 1, 1, 2], [0], [0]>} : vector<4x8x8xbf16>, vector<4x8x8xbf16>, vector<4x8x8xf32> -> vector<4x8x8xf32>
    "tpu.trace_stop"() : () -> ()
    %17 = tpu.reciprocal %14 : vector<4x8x1xf32> -> vector<4x8x1xf32>
    %18 = vector.broadcast %17 : vector<4x8x1xf32> to vector<4x8x8xf32>
    %19 = arith.mulf %16, %18 : vector<4x8x8xf32>
    %20 = vector.extract_strided_slice %19 {offsets = [0, 0, 0], sizes = [1, 8, 8], strides = [1, 1, 1]} : vector<4x8x8xf32> to vector<1x8x8xf32>
    %21 = vector.shape_cast %20 : vector<1x8x8xf32> to vector<8x8xf32>
    %22 = arith.truncf %21 : vector<8x8xf32> to vector<8x8xbf16>
    %c0_13 = arith.constant 0 : index
    %c0_14 = arith.constant 0 : index
    %c0_15 = arith.constant 0 : index
    %23 = vector.load %arg8[%c0_13, %c0_14, %c0_15] : memref<4x8x128xbf16, #tpu.memory_space<vmem>>, vector<1x8x128xbf16>
    %24 = vector.shape_cast %23 : vector<1x8x128xbf16> to vector<8x128xbf16>
    %cst_16 = arith.constant dense<0.000000e+00> : vector<8x128xf32>
    %25 = tpu.matmul %22, %24, %cst_16 {dimension_numbers = #tpu.dot_dimension_numbers<[1], [0], [0], [1], [0, 0, 1, 1], [], []>} : vector<8x8xbf16>, vector<8x128xbf16>, vector<8x128xf32> -> vector<8x128xf32>
    %26 = vector.extract_strided_slice %19 {offsets = [1, 0, 0], sizes = [1, 8, 8], strides = [1, 1, 1]} : vector<4x8x8xf32> to vector<1x8x8xf32>
    %27 = vector.shape_cast %26 : vector<1x8x8xf32> to vector<8x8xf32>
    %28 = arith.truncf %27 : vector<8x8xf32> to vector<8x8xbf16>
    %c1 = arith.constant 1 : index
    %c0_17 = arith.constant 0 : index
    %c0_18 = arith.constant 0 : index
    %29 = vector.load %arg8[%c1, %c0_17, %c0_18] : memref<4x8x128xbf16, #tpu.memory_space<vmem>>, vector<1x8x128xbf16>
    %30 = vector.shape_cast %29 : vector<1x8x128xbf16> to vector<8x128xbf16>
    %cst_19 = arith.constant dense<0.000000e+00> : vector<8x128xf32>
    %31 = tpu.matmul %28, %30, %cst_19 {dimension_numbers = #tpu.dot_dimension_numbers<[1], [0], [0], [1], [0, 0, 1, 1], [], []>} : vector<8x8xbf16>, vector<8x128xbf16>, vector<8x128xf32> -> vector<8x128xf32>
    %32 = arith.addf %25, %31 : vector<8x128xf32>
    %33 = vector.extract_strided_slice %19 {offsets = [2, 0, 0], sizes = [1, 8, 8], strides = [1, 1, 1]} : vector<4x8x8xf32> to vector<1x8x8xf32>
    %34 = vector.shape_cast %33 : vector<1x8x8xf32> to vector<8x8xf32>
    %35 = arith.truncf %34 : vector<8x8xf32> to vector<8x8xbf16>
    %c2 = arith.constant 2 : index
    %c0_20 = arith.constant 0 : index
    %c0_21 = arith.constant 0 : index
    %36 = vector.load %arg8[%c2, %c0_20, %c0_21] : memref<4x8x128xbf16, #tpu.memory_space<vmem>>, vector<1x8x128xbf16>
    %37 = vector.shape_cast %36 : vector<1x8x128xbf16> to vector<8x128xbf16>
    %cst_22 = arith.constant dense<0.000000e+00> : vector<8x128xf32>
    %38 = tpu.matmul %35, %37, %cst_22 {dimension_numbers = #tpu.dot_dimension_numbers<[1], [0], [0], [1], [0, 0, 1, 1], [], []>} : vector<8x8xbf16>, vector<8x128xbf16>, vector<8x128xf32> -> vector<8x128xf32>
    %39 = arith.addf %32, %38 : vector<8x128xf32>
    %40 = vector.extract_strided_slice %19 {offsets = [3, 0, 0], sizes = [1, 8, 8], strides = [1, 1, 1]} : vector<4x8x8xf32> to vector<1x8x8xf32>
    %41 = vector.shape_cast %40 : vector<1x8x8xf32> to vector<8x8xf32>
    %42 = arith.truncf %41 : vector<8x8xf32> to vector<8x8xbf16>
    %c3 = arith.constant 3 : index
    %c0_23 = arith.constant 0 : index
    %c0_24 = arith.constant 0 : index
    %43 = vector.load %arg8[%c3, %c0_23, %c0_24] : memref<4x8x128xbf16, #tpu.memory_space<vmem>>, vector<1x8x128xbf16>
    %44 = vector.shape_cast %43 : vector<1x8x128xbf16> to vector<8x128xbf16>
    %cst_25 = arith.constant dense<0.000000e+00> : vector<8x128xf32>
    %45 = tpu.matmul %42, %44, %cst_25 {dimension_numbers = #tpu.dot_dimension_numbers<[1], [0], [0], [1], [0, 0, 1, 1], [], []>} : vector<8x8xbf16>, vector<8x128xbf16>, vector<8x128xf32> -> vector<8x128xf32>
    %46 = arith.addf %39, %45 : vector<8x128xf32>
    %c0_26 = arith.constant 0 : index
    %c0_27 = arith.constant 0 : index
    %47 = vector.load %arg9[%c0_26, %c0_27] : memref<1x128xf32, #tpu.memory_space<vmem>>, vector<1x128xf32>
    %48 = vector.broadcast %47 : vector<1x128xf32> to vector<8x128xf32>
    %49 = arith.addf %46, %48 : vector<8x128xf32>
    %c0_28 = arith.constant 0 : index
    %c0_29 = arith.constant 0 : index
    %c0_30 = arith.constant 0 : index
    %50 = vector.load %arg10[%c0_28, %c0_29, %c0_30] : memref<1x8x128xf32, #tpu.memory_space<vmem>>, vector<1x8x128xf32>
    %51 = vector.shape_cast %50 : vector<1x8x128xf32> to vector<8x128xf32>
    %52 = vector.shape_cast %49 : vector<8x128xf32> to vector<1x8x128xf32>
    tpu.vector_store %arg10[%c0_28, %c0_29, %c0_30], %52 {strides = array<i32>} : memref<1x8x128xf32, #tpu.memory_space<vmem>>, vector<1x8x128xf32>,
    return
  }
  func.func @transform_0(%arg0: i32, %arg1: i32) -> (i32, i32, i32, i32) {
    %c0_i32 = arith.constant 0 : i32
    %c0_i32_0 = arith.constant 0 : i32
    %c0_i32_1 = arith.constant 0 : i32
    return %arg0, %c0_i32, %arg1, %c0_i32_0 : i32, i32, i32, i32
  }
  func.func @transform_1(%arg0: i32, %arg1: i32) -> (i32, i32, i32) {
    %c0_i32 = arith.constant 0 : i32
    %c0_i32_0 = arith.constant 0 : i32
    %c0_i32_1 = arith.constant 0 : i32
    return %arg0, %c0_i32, %c0_i32_0 : i32, i32, i32
  }
  func.func @transform_2(%arg0: i32, %arg1: i32) -> (i32, i32, i32) {
    %c0_i32 = arith.constant 0 : i32
    %c0_i32_0 = arith.constant 0 : i32
    %c0_i32_1 = arith.constant 0 : i32
    %c0_i32_2 = arith.constant 0 : i32
    return %c0_i32, %c0_i32_0, %c0_i32_1 : i32, i32, i32
  }
  func.func @transform_3(%arg0: i32, %arg1: i32) -> (i32, i32, i32) {
    %c0_i32 = arith.constant 0 : i32
    %c0_i32_0 = arith.constant 0 : i32
    %c0_i32_1 = arith.constant 0 : i32
    %c0_i32_2 = arith.constant 0 : i32
    return %c0_i32, %c0_i32_0, %c0_i32_1 : i32, i32, i32
  }
  func.func @transform_4(%arg0: i32, %arg1: i32) -> (i32, i32, i32) {
    %c0_i32 = arith.constant 0 : i32
    %c0_i32_0 = arith.constant 0 : i32
    %c0_i32_1 = arith.constant 0 : i32
    %c0_i32_2 = arith.constant 0 : i32
    return %c0_i32, %c0_i32_0, %c0_i32_1 : i32, i32, i32
  }
  func.func @transform_5(%arg0: i32, %arg1: i32) -> (i32, i32, i32) {
    %c0_i32 = arith.constant 0 : i32
    %c0_i32_0 = arith.constant 0 : i32
    %c0_i32_1 = arith.constant 0 : i32
    %c0_i32_2 = arith.constant 0 : i32
    return %c0_i32, %c0_i32_0, %c0_i32_1 : i32, i32, i32
  }
  func.func @transform_6(%arg0: i32, %arg1: i32) -> (i32, i32, i32) {
    %c0_i32 = arith.constant 0 : i32
    %c0_i32_0 = arith.constant 0 : i32
    %c0_i32_1 = arith.constant 0 : i32
    %c0_i32_2 = arith.constant 0 : i32
    return %c0_i32, %c0_i32_0, %c0_i32_1 : i32, i32, i32
  }
  func.func @transform_7(%arg0: i32, %arg1: i32) -> (i32, i32) {
    %c0_i32 = arith.constant 0 : i32
    %c0_i32_0 = arith.constant 0 : i32
    %c0_i32_1 = arith.constant 0 : i32
    return %c0_i32, %c0_i32_0 : i32, i32
  }
  func.func @transform_8(%arg0: i32, %arg1: i32) -> (i32, i32, i32) {
    %c0_i32 = arith.constant 0 : i32
    %c0_i32_0 = arith.constant 0 : i32
    return %arg0, %arg1, %c0_i32 : i32, i32, i32
  }
}

module attributes {stable_mosaic.version = 11 : i64} {
  func.func @mha_kernel(%arg0: i32, %arg1: i32, %arg2: memref<1x4x8x8xbf16, #tpu.memory_space<vmem>>, %arg3: memref<1x8x16xbf16, #tpu.memory_space<vmem>>, %arg4: memref<4x16x8xbf16, #tpu.memory_space<vmem>>, %arg5: memref<4x16x8xbf16, #tpu.memory_space<vmem>>, %arg6: memref<4x1x8xf32, #tpu.memory_space<vmem>>, %arg7: memref<4x1x8xf32, #tpu.memory_space<vmem>>, %arg8: memref<4x8x128xbf16, #tpu.memory_space<vmem>>, %arg9: memref<1x128xf32, #tpu.memory_space<vmem>>, %arg10: memref<1x8x128xf32, #tpu.memory_space<vmem>>, %arg11: memref<4x8x8xbf16, #tpu.memory_space<vmem>>, %arg12: memref<4x8x8xbf16, #tpu.memory_space<vmem>>) attributes {dimension_semantics = [#tpu.dimension_semantics<parallel>, #tpu.dimension_semantics<arbitrary>], iteration_bounds = array<i64: 2, 1>, scalar_prefetch = 0 : i64, scratch_operands = 2 : i64, tpu.core_type = #tpu.core_type<tc>, window_params = [{transform_indices = @transform_0, window_bounds = array<i64: 1, 4, 8, 8>}, {transform_indices = @transform_1, window_bounds = array<i64: 1, 8, 16>}, {pipeline_mode = #tpu.pipeline_mode<synchronous>, transform_indices = @transform_2, window_bounds = array<i64: 4, 16, 8>}, {pipeline_mode = #tpu.pipeline_mode<synchronous>, transform_indices = @transform_3, window_bounds = array<i64: 4, 16, 8>}, {pipeline_mode = #tpu.pipeline_mode<synchronous>, transform_indices = @transform_4, window_bounds = array<i64: 4, 1, 8>}, {pipeline_mode = #tpu.pipeline_mode<synchronous>, transform_indices = @transform_5, window_bounds = array<i64: 4, 1, 8>}, {pipeline_mode = #tpu.pipeline_mode<synchronous>, transform_indices = @transform_6, window_bounds = array<i64: 4, 8, 128>}, {pipeline_mode = #tpu.pipeline_mode<synchronous>, transform_indices = @transform_7, window_bounds = array<i64: 1, 128>}, {transform_indices = @transform_8, window_bounds = array<i64: 1, 8, 128>}]} {
    %c0_i32 = arith.constant 0 : i32
    %0 = arith.cmpi eq, %arg1, %c0_i32 : i32
    %1 = arith.extui %0 : i1 to i32
    %c0_i32_0 = arith.constant 0 : i32
    %2 = arith.cmpi ne, %1, %c0_i32_0 : i32
    scf.if %2 {
      %c0_31 = arith.constant 0 : index
      %c0_32 = arith.constant 0 : index
      %c0_33 = arith.constant 0 : index
      %53 = vector.load %arg3[%c0_31, %c0_32, %c0_33] : memref<1x8x16xbf16, #tpu.memory_space<vmem>>, vector<1x8x16xbf16>
      %54 = vector.shape_cast %53 : vector<1x8x16xbf16> to vector<8x16xbf16>
      %55 = vector.shape_cast %54 : vector<8x16xbf16> to vector<1x8x16xbf16>
      %56 = vector.broadcast %55 : vector<1x8x16xbf16> to vector<4x8x16xbf16>
      %c0_34 = arith.constant 0 : index
      %c0_35 = arith.constant 0 : index
      %c0_36 = arith.constant 0 : index
      %57 = vector.load %arg4[%c0_34, %c0_35, %c0_36] : memref<4x16x8xbf16, #tpu.memory_space<vmem>>, vector<4x16x8xbf16>
      "tpu.trace_start"() <{level = 10 : i32, message = "hld,hdo->hlo"}> : () -> ()
      %cst_37 = arith.constant dense<0.000000e+00> : vector<4x8x8xf32>
      %58 = tpu.matmul %56, %57, %cst_37 {dimension_numbers = #tpu.dot_dimension_numbers<[2], [1], [1], [2], [0, 0, 0, 1, 1, 2], [0], [0]>} : vector<4x8x16xbf16>, vector<4x16x8xbf16>, vector<4x8x8xf32> -> vector<4x8x8xf32>
      "tpu.trace_stop"() : () -> ()
      %c0_38 = arith.constant 0 : index
      %c0_39 = arith.constant 0 : index
      %c0_40 = arith.constant 0 : index
      %59 = vector.load %arg6[%c0_38, %c0_39, %c0_40] : memref<4x1x8xf32, #tpu.memory_space<vmem>>, vector<4x1x8xf32>
      %60 = vector.broadcast %59 : vector<4x1x8xf32> to vector<4x8x8xf32>
      %61 = arith.addf %58, %60 : vector<4x8x8xf32>
      %c0_41 = arith.constant 0 : index
      %c0_42 = arith.constant 0 : index
      %c0_43 = arith.constant 0 : index
      %62 = vector.load %arg5[%c0_41, %c0_42, %c0_43] : memref<4x16x8xbf16, #tpu.memory_space<vmem>>, vector<4x16x8xbf16>
      "tpu.trace_start"() <{level = 10 : i32, message = "hld,hdo->hlo"}> : () -> ()
      %cst_44 = arith.constant dense<0.000000e+00> : vector<4x8x8xf32>
      %63 = tpu.matmul %56, %62, %cst_44 {dimension_numbers = #tpu.dot_dimension_numbers<[2], [1], [1], [2], [0, 0, 0, 1, 1, 2], [0], [0]>} : vector<4x8x16xbf16>, vector<4x16x8xbf16>, vector<4x8x8xf32> -> vector<4x8x8xf32>
      "tpu.trace_stop"() : () -> ()
      %c0_45 = arith.constant 0 : index
      %c0_46 = arith.constant 0 : index
      %c0_47 = arith.constant 0 : index
      %64 = vector.load %arg7[%c0_45, %c0_46, %c0_47] : memref<4x1x8xf32, #tpu.memory_space<vmem>>, vector<4x1x8xf32>
      %65 = vector.broadcast %64 : vector<4x1x8xf32> to vector<4x8x8xf32>
      %66 = arith.addf %63, %65 : vector<4x8x8xf32>
      %67 = arith.truncf %61 : vector<4x8x8xf32> to vector<4x8x8xbf16>
      %c0_48 = arith.constant 0 : index
      %c0_49 = arith.constant 0 : index
      %c0_50 = arith.constant 0 : index
      %68 = vector.load %arg11[%c0_48, %c0_49, %c0_50] : memref<4x8x8xbf16, #tpu.memory_space<vmem>>, vector<4x8x8xbf16>
      tpu.vector_store %arg11[%c0_48, %c0_49, %c0_50], %67 {strides = array<i32>} : memref<4x8x8xbf16, #tpu.memory_space<vmem>>, vector<4x8x8xbf16>,
      %69 = arith.truncf %66 : vector<4x8x8xf32> to vector<4x8x8xbf16>
      %c0_51 = arith.constant 0 : index
      %c0_52 = arith.constant 0 : index
      %c0_53 = arith.constant 0 : index
      %70 = vector.load %arg12[%c0_51, %c0_52, %c0_53] : memref<4x8x8xbf16, #tpu.memory_space<vmem>>, vector<4x8x8xbf16>
      tpu.vector_store %arg12[%c0_51, %c0_52, %c0_53], %69 {strides = array<i32>} : memref<4x8x8xbf16, #tpu.memory_space<vmem>>, vector<4x8x8xbf16>,
    } else {
    }
    %c0 = arith.constant 0 : index
    %c0_1 = arith.constant 0 : index
    %c0_2 = arith.constant 0 : index
    %c0_3 = arith.constant 0 : index
    %3 = vector.load %arg2[%c0, %c0_1, %c0_2, %c0_3] : memref<1x4x8x8xbf16, #tpu.memory_space<vmem>>, vector<1x4x8x8xbf16>
    %4 = vector.shape_cast %3 : vector<1x4x8x8xbf16> to vector<4x8x8xbf16>
    %c0_4 = arith.constant 0 : index
    %c0_5 = arith.constant 0 : index
    %c0_6 = arith.constant 0 : index
    %5 = vector.load %arg11[%c0_4, %c0_5, %c0_6] : memref<4x8x8xbf16, #tpu.memory_space<vmem>>, vector<4x8x8xbf16>
    %c0_7 = arith.constant 0 : index
    %c0_8 = arith.constant 0 : index
    %c0_9 = arith.constant 0 : index
    %6 = vector.load %arg12[%c0_7, %c0_8, %c0_9] : memref<4x8x8xbf16, #tpu.memory_space<vmem>>, vector<4x8x8xbf16>
    "tpu.trace_start"() <{level = 10 : i32, message = "hqd,hkd->hqk"}> : () -> ()
    %cst = arith.constant dense<0.000000e+00> : vector<4x8x8xf32>
    %7 = tpu.matmul %4, %5, %cst {dimension_numbers = #tpu.dot_dimension_numbers<[2], [2], [1], [1], [0, 0, 0, 1, 1, 1], [0], [0]>} : vector<4x8x8xbf16>, vector<4x8x8xbf16>, vector<4x8x8xf32> -> vector<4x8x8xf32>
    "tpu.trace_stop"() : () -> ()
    %cst_10 = arith.constant dense<0xFF800000> : vector<4x8xf32>
    %8 = vector.multi_reduction <maximumf>, %7, %cst_10 [2] : vector<4x8x8xf32> to vector<4x8xf32>
    %9 = vector.shape_cast %8 : vector<4x8xf32> to vector<4x8x1xf32>
    %10 = vector.broadcast %9 : vector<4x8x1xf32> to vector<4x8x8xf32>
    %11 = arith.subf %7, %10 : vector<4x8x8xf32>
    %12 = math.exp %11 : vector<4x8x8xf32>
    %cst_11 = arith.constant dense<0.000000e+00> : vector<4x8xf32>
    %13 = vector.multi_reduction <add>, %12, %cst_11 [2] : vector<4x8x8xf32> to vector<4x8xf32>
    %14 = vector.shape_cast %13 : vector<4x8xf32> to vector<4x8x1xf32>
    %15 = arith.truncf %12 : vector<4x8x8xf32> to vector<4x8x8xbf16>
    "tpu.trace_start"() <{level = 10 : i32, message = "hqk,hkd->hqd"}> : () -> ()
    %cst_12 = arith.constant dense<0.000000e+00> : vector<4x8x8xf32>
    %16 = tpu.matmul %15, %6, %cst_12 {dimension_numbers = #tpu.dot_dimension_numbers<[2], [1], [1], [2], [0, 0, 0, 1, 1, 2], [0], [0]>} : vector<4x8x8xbf16>, vector<4x8x8xbf16>, vector<4x8x8xf32> -> vector<4x8x8xf32>
    "tpu.trace_stop"() : () -> ()
    %17 = tpu.reciprocal %14 : vector<4x8x1xf32> -> vector<4x8x1xf32>
    %18 = vector.broadcast %17 : vector<4x8x1xf32> to vector<4x8x8xf32>
    %19 = arith.mulf %16, %18 : vector<4x8x8xf32>
    %20 = vector.extract_strided_slice %19 {offsets = [0, 0, 0], sizes = [1, 8, 8], strides = [1, 1, 1]} : vector<4x8x8xf32> to vector<1x8x8xf32>
    %21 = vector.shape_cast %20 : vector<1x8x8xf32> to vector<8x8xf32>
    %22 = arith.truncf %21 : vector<8x8xf32> to vector<8x8xbf16>
    %c0_13 = arith.constant 0 : index
    %c0_14 = arith.constant 0 : index
    %c0_15 = arith.constant 0 : index
    %23 = vector.load %arg8[%c0_13, %c0_14, %c0_15] : memref<4x8x128xbf16, #tpu.memory_space<vmem>>, vector<1x8x128xbf16>
    %24 = vector.shape_cast %23 : vector<1x8x128xbf16> to vector<8x128xbf16>
    %cst_16 = arith.constant dense<0.000000e+00> : vector<8x128xf32>
    %25 = tpu.matmul %22, %24, %cst_16 {dimension_numbers = #tpu.dot_dimension_numbers<[1], [0], [0], [1], [0, 0, 1, 1], [], []>} : vector<8x8xbf16>, vector<8x128xbf16>, vector<8x128xf32> -> vector<8x128xf32>
    %26 = vector.extract_strided_slice %19 {offsets = [1, 0, 0], sizes = [1, 8, 8], strides = [1, 1, 1]} : vector<4x8x8xf32> to vector<1x8x8xf32>
    %27 = vector.shape_cast %26 : vector<1x8x8xf32> to vector<8x8xf32>
    %28 = arith.truncf %27 : vector<8x8xf32> to vector<8x8xbf16>
    %c1 = arith.constant 1 : index
    %c0_17 = arith.constant 0 : index
    %c0_18 = arith.constant 0 : index
    %29 = vector.load %arg8[%c1, %c0_17, %c0_18] : memref<4x8x128xbf16, #tpu.memory_space<vmem>>, vector<1x8x128xbf16>
    %30 = vector.shape_cast %29 : vector<1x8x128xbf16> to vector<8x128xbf16>
    %cst_19 = arith.constant dense<0.000000e+00> : vector<8x128xf32>
    %31 = tpu.matmul %28, %30, %cst_19 {dimension_numbers = #tpu.dot_dimension_numbers<[1], [0], [0], [1], [0, 0, 1, 1], [], []>} : vector<8x8xbf16>, vector<8x128xbf16>, vector<8x128xf32> -> vector<8x128xf32>
    %32 = arith.addf %25, %31 : vector<8x128xf32>
    %33 = vector.extract_strided_slice %19 {offsets = [2, 0, 0], sizes = [1, 8, 8], strides = [1, 1, 1]} : vector<4x8x8xf32> to vector<1x8x8xf32>
    %34 = vector.shape_cast %33 : vector<1x8x8xf32> to vector<8x8xf32>
    %35 = arith.truncf %34 : vector<8x8xf32> to vector<8x8xbf16>
    %c2 = arith.constant 2 : index
    %c0_20 = arith.constant 0 : index
    %c0_21 = arith.constant 0 : index
    %36 = vector.load %arg8[%c2, %c0_20, %c0_21] : memref<4x8x128xbf16, #tpu.memory_space<vmem>>, vector<1x8x128xbf16>
    %37 = vector.shape_cast %36 : vector<1x8x128xbf16> to vector<8x128xbf16>
    %cst_22 = arith.constant dense<0.000000e+00> : vector<8x128xf32>
    %38 = tpu.matmul %35, %37, %cst_22 {dimension_numbers = #tpu.dot_dimension_numbers<[1], [0], [0], [1], [0, 0, 1, 1], [], []>} : vector<8x8xbf16>, vector<8x128xbf16>, vector<8x128xf32> -> vector<8x128xf32>
    %39 = arith.addf %32, %38 : vector<8x128xf32>
    %40 = vector.extract_strided_slice %19 {offsets = [3, 0, 0], sizes = [1, 8, 8], strides = [1, 1, 1]} : vector<4x8x8xf32> to vector<1x8x8xf32>
    %41 = vector.shape_cast %40 : vector<1x8x8xf32> to vector<8x8xf32>
    %42 = arith.truncf %41 : vector<8x8xf32> to vector<8x8xbf16>
    %c3 = arith.constant 3 : index
    %c0_23 = arith.constant 0 : index
    %c0_24 = arith.constant 0 : index
    %43 = vector.load %arg8[%c3, %c0_23, %c0_24] : memref<4x8x128xbf16, #tpu.memory_space<vmem>>, vector<1x8x128xbf16>
    %44 = vector.shape_cast %43 : vector<1x8x128xbf16> to vector<8x128xbf16>
    %cst_25 = arith.constant dense<0.000000e+00> : vector<8x128xf32>
    %45 = tpu.matmul %42, %44, %cst_25 {dimension_numbers = #tpu.dot_dimension_numbers<[1], [0], [0], [1], [0, 0, 1, 1], [], []>} : vector<8x8xbf16>, vector<8x128xbf16>, vector<8x128xf32> -> vector<8x128xf32>
    %46 = arith.addf %39, %45 : vector<8x128xf32>
    %c0_26 = arith.constant 0 : index
    %c0_27 = arith.constant 0 : index
    %47 = vector.load %arg9[%c0_26, %c0_27] : memref<1x128xf32, #tpu.memory_space<vmem>>, vector<1x128xf32>
    %48 = vector.broadcast %47 : vector<1x128xf32> to vector<8x128xf32>
    %49 = arith.addf %46, %48 : vector<8x128xf32>
    %c0_28 = arith.constant 0 : index
    %c0_29 = arith.constant 0 : index
    %c0_30 = arith.constant 0 : index
    %50 = vector.load %arg10[%c0_28, %c0_29, %c0_30] : memref<1x8x128xf32, #tpu.memory_space<vmem>>, vector<1x8x128xf32>
    %51 = vector.shape_cast %50 : vector<1x8x128xf32> to vector<8x128xf32>
    %52 = vector.shape_cast %49 : vector<8x128xf32> to vector<1x8x128xf32>
    tpu.vector_store %arg10[%c0_28, %c0_29, %c0_30], %52 {strides = array<i32>} : memref<1x8x128xf32, #tpu.memory_space<vmem>>, vector<1x8x128xf32>,
    return
  }
  func.func @transform_0(%arg0: i32, %arg1: i32) -> (i32, i32, i32, i32) {
    %c0_i32 = arith.constant 0 : i32
    %c0_i32_0 = arith.constant 0 : i32
    %c0_i32_1 = arith.constant 0 : i32
    return %arg0, %c0_i32, %arg1, %c0_i32_0 : i32, i32, i32, i32
  }
  func.func @transform_1(%arg0: i32, %arg1: i32) -> (i32, i32, i32) {
    %c0_i32 = arith.constant 0 : i32
    %c0_i32_0 = arith.constant 0 : i32
    %c0_i32_1 = arith.constant 0 : i32
    return %arg0, %c0_i32, %c0_i32_0 : i32, i32, i32
  }
  func.func @transform_2(%arg0: i32, %arg1: i32) -> (i32, i32, i32) {
    %c0_i32 = arith.constant 0 : i32
    %c0_i32_0 = arith.constant 0 : i32
    %c0_i32_1 = arith.constant 0 : i32
    %c0_i32_2 = arith.constant 0 : i32
    return %c0_i32, %c0_i32_0, %c0_i32_1 : i32, i32, i32
  }
  func.func @transform_3(%arg0: i32, %arg1: i32) -> (i32, i32, i32) {
    %c0_i32 = arith.constant 0 : i32
    %c0_i32_0 = arith.constant 0 : i32
    %c0_i32_1 = arith.constant 0 : i32
    %c0_i32_2 = arith.constant 0 : i32
    return %c0_i32, %c0_i32_0, %c0_i32_1 : i32, i32, i32
  }
  func.func @transform_4(%arg0: i32, %arg1: i32) -> (i32, i32, i32) {
    %c0_i32 = arith.constant 0 : i32
    %c0_i32_0 = arith.constant 0 : i32
    %c0_i32_1 = arith.constant 0 : i32
    %c0_i32_2 = arith.constant 0 : i32
    return %c0_i32, %c0_i32_0, %c0_i32_1 : i32, i32, i32
  }
  func.func @transform_5(%arg0: i32, %arg1: i32) -> (i32, i32, i32) {
    %c0_i32 = arith.constant 0 : i32
    %c0_i32_0 = arith.constant 0 : i32
    %c0_i32_1 = arith.constant 0 : i32
    %c0_i32_2 = arith.constant 0 : i32
    return %c0_i32, %c0_i32_0, %c0_i32_1 : i32, i32, i32
  }
  func.func @transform_6(%arg0: i32, %arg1: i32) -> (i32, i32, i32) {
    %c0_i32 = arith.constant 0 : i32
    %c0_i32_0 = arith.constant 0 : i32
    %c0_i32_1 = arith.constant 0 : i32
    %c0_i32_2 = arith.constant 0 : i32
    return %c0_i32, %c0_i32_0, %c0_i32_1 : i32, i32, i32
  }
  func.func @transform_7(%arg0: i32, %arg1: i32) -> (i32, i32) {
    %c0_i32 = arith.constant 0 : i32
    %c0_i32_0 = arith.constant 0 : i32
    %c0_i32_1 = arith.constant 0 : i32
    return %c0_i32, %c0_i32_0 : i32, i32
  }
  func.func @transform_8(%arg0: i32, %arg1: i32) -> (i32, i32, i32) {
    %c0_i32 = arith.constant 0 : i32
    %c0_i32_0 = arith.constant 0 : i32
    return %arg0, %arg1, %c0_i32 : i32, i32, i32
  }
}

</mosaic_0001>

<bundles_post_ra>
// kernel: tpu_custom_call.1
= control target key start
LH: loop header
LB: loop body
LE: loop exit
PB: predicated region body
PF: predicated region fallthrough
CT: control target
= control target key end

     0   :  { %13 = vsyncpa [#allocation5], 0  ;;  %s2263_s0 = inlined_call_operand.vmem [shape: bf16[2,4,8,8], index: 0, kind: input, shape index: {}]   ;;  %s2264_s1 = inlined_call_operand.vmem [shape: bf16[2,8,16], index: 1, kind: input, shape index: {}]   ;;  %s2265_s2 = inlined_call_operand.vmem [shape: bf16[4,16,8], index: 2, kind: input, shape index: {}]   ;;  %s2266_s3 = inlined_call_operand.vmem [shape: bf16[4,16,8], index: 3, kind: input, shape index: {}]   ;;  %s2267_s4 = inlined_call_operand.vmem [shape: f32[4,1,8], index: 4, kind: input, shape index: {}]   ;;  %s2268_s5 = inlined_call_operand.vmem [shape: f32[4,1,8], index: 5, kind: input, shape index: {}]   ;;  %s2269_s6 = inlined_call_operand.vmem [shape: bf16[4,8,128], index: 6, kind: input, shape index: {}]   ;;  %s2270_s7 = inlined_call_operand.vmem [shape: f32[1,128], index: 7, kind: input, shape index: {}]   ;;  %s2271_s8 = inlined_call_operand.hbm [shape: f32[2,8,128], index: 8, kind: output, shape index: {}]  }
   0x1   :  { %15 = vsyncpa [#allocation5 + $0x1], 0  ;;  %s1974_s27 = smov 0   ;;  %s1976_s28 = smov 0  }
   0x2   :  { %s1978_s29 = smov 0   ;;  %s1980_s30 = smov 0  }
   0x3   :  { %s1982_s9 = smov 0   ;;  %s1984_s10 = smov 0  }
   0x4 LB: > { %s1553_s11 = sadd.s32 4294967295, %s1924_s10   ;;  %s1554_s12 = sadd.s32 4294967294, %s1924_s10   ;;  %s1924_s10 = sphi %s1984_s10, %s21_s10   ;;  %s1920_s9 = sphi %s1982_s9, %s2278_s9   ;;  %s1916_s30 = sphi %s1980_s30, %s2277_s30   ;;  %s1912_s29 = sphi %s1978_s29, %s2276_s29   ;;  %s1908_s28 = sphi %s1976_s28, %s2275_s28   ;;  %s1904_s27 = sphi %s1974_s27, %s2274_s27  }
   0x5   : > { %s33_s13 = sadd.s32 1, %s1920_s9  ;;  %s222_s14 = sadd.s32 1, %s1912_s29 }
   0x6   : > { %p35_p0 = scmp.ge.s32.totalorder %s33_s13, 2  ;;  %p232_p1 = scmp.ne.s32.totalorder %s1912_s29, %s1908_s28 }
   0x7   : > { %p233_p2 = scmp.eq.s32.totalorder %s1553_s11, 1  ;;  %p238_p3 = scmp.ne.s32.totalorder %s1908_s28, %s1904_s27 }
   0x8   : > { %s2280_s13 = smov (%p35_p0, %s33_s13), 0  ;;  %p239_p5 = scmp.eq.s32.totalorder %s1554_s12, 1 }
   0x9   : > { %p2014_p4 = por %p233_p2, %p232_p1  ;;  %s217_s16 = ssub.s32 %s1920_s9, %s2280_s13 }
   0xa   : > { %p1557_p6 = scmp.ge.s32.totalorder %s1924_s10, 1  ;;  %p220_p7 = scmp.eq.s32.totalorder %s217_s16, 0 }
   0xb   : > { %p2021_p8 = por %p239_p5, %p238_p3  ;;  %p293_p9 = scmp.lt.s32.totalorder %s1924_s10, 3 }
   0xc   : > { %s2027_s18 = scalar_select %p220_p7, %s1912_s29, %s222_s14  }
   0xd   : > { %p294_p10 = pnand %p1557_p6, %p293_p9 }
   0xe   : > { %p334_p11 = scmp.lt.s32.totalorder (!%p294_p10), %s1916_s30, 1  ;;  %s331_s21 = sand.u32 (!%p294_p10), 1, %s1908_s28  }
   0xf   : > { %297 = sbr.rel (%p294_p10) target bundleno = 1011 (0x3f3), region = 52  ;;  %s1558_s22 = sshll.u32 (!%p294_p10), %s331_s21, 3 }
  0x10   : > { %s333_s11 = scalar_lea.vmem (!%p294_p10), [#allocation4], %s1558_s22  ;;  %s1928_s20 = smov (!%p294_p10), [#allocation4]  }
  0x11   : > { %s1464_s12 = sshll.u32 (!%p294_p10), %s333_s11, 4  ;;  %s1852_s22 = sshll.u32 (!%p294_p10), %s1928_s20, 4  ;;  %s2219_s12 = int_to_ptr.vmem [resolvable:$true] %s1464_s12  ;;  %s1853_s22 = int_to_ptr.vmem [resolvable:$false] %s1852_s22 }
  0x12   : > { %s1854_s24 = scalar_lea.vmem (!%p294_p10), %s1853_s22, 256  ;;  %p1855_p1 = scmp.lt.s32.totalorder (!%p294_p10), %s2219_s12, %s1853_s22 }
  0x14   : > { %v1824_v0 = vld [vmem:[%s2265_s2] sm:$0xff]   ;;  %v1926_v1 = vmov 0.0   ;;  %v1825_v2 = vld [vmem:[%s2265_s2 + $0x8] sm:$0xff]   ;;  %vm1927_vm0 = vmmov 0   ;;  %s2043_s23 = scalar_select %p334_p11, %s1916_s30, 1  ;;  %vm394_vm1 = vcmask 130048  }
  0x15   : > { %1647 = vmatprep.subr.bf16.mxu0 %v1926_v1  ;;  %1653 = vmatprep.subr.bf16.mxu1 %v1926_v1  ;;  %v1826_v3 = vld [vmem:[%s2265_s2 + $0x10] sm:$0xff]   ;;  %v1827_v4 = vld [vmem:[%s2265_s2 + $0x18] sm:$0xff]   ;;  %v1828_v6 = vld [vmem:[%s2266_s3] sm:$0xff]   ;;  %vm800_vm2 = vcmask 60416   ;;  %vm825_vm3 = vcmask 64512   ;;  %vm1053_vm4 = vcmask 1043456  }
  0x16   : > { %1648 = vmatpush3.bf16.msra.mxu0 %v1824_v0  ;;  %1649 = vmatprep.mubr.msk.bf16.mxu0 %vm1927_vm0, %v1926_v1  ;;  %s1561_s26 = sshll.u32 %s2043_s23, 2  ;;  %v1829_v7 = vld [vmem:[%s2266_s3 + $0x8] sm:$0xff]   ;;  %v1830_v8 = vld [vmem:[%s2266_s3 + $0x10] sm:$0xff]   ;;  %v1831_v9 = vld [vmem:[%s2266_s3 + $0x18] sm:$0xff]  }
  0x17   : > { %1654 = vmatpush3.bf16.msra.mxu1 %v1825_v2  ;;  %1655 = vmatprep.mubr.msk.bf16.mxu1 %vm1927_vm0, %v1926_v1  ;;  %s345_s19 = scalar_lea.vmem %s2264_s1, %s1561_s26  ;;  %v1562_v10 = vld [vmem:[%s2267_s4] ss:$0 sm:$0xff]  ;;  %v1563_v11 = vld [vmem:[%s2267_s4 + $0x1] ss:$0 sm:$0xff]  ;;  %v1564_v24 = vld [vmem:[%s2267_s4 + $0x2] ss:$0 sm:$0xff] }
  0x18   : > { %1659 = vmatprep.subr.bf16.mxu0 %v1926_v1  ;;  %1665 = vmatprep.subr.bf16.mxu1 %v1926_v1  ;;  %v351_v5 = vld [vmem:[%s345_s19] sm:$0xf]  ;;  %s1606_s26 = sshll.u32 %s2043_s23, 4  ;;  %s1848_s19 = scalar_lea.vmem %s2219_s12, 128 }
  0x19   : > { %1650 = vmatmul.mubr.msk.bf16.vlgmr.msra.gmra.mxu0 %vm394_vm1, %v351_v5  ;;  %v1565_v25 = vld [vmem:[%s2267_s4 + $0x3] ss:$0 sm:$0xff]  ;;  %v1574_v42 = vld [vmem:[%s2268_s5] ss:$0 sm:$0xff]  ;;  %s341_s23 = scalar_lea.vmem %s2263_s0, %s1606_s26  ;;  %v1575_v59 = vld [vmem:[%s2268_s5 + $0x1] ss:$0 sm:$0xff]  ;;  %p1849_p12 = scmp.ne.s32.totalorder %s2219_s12, %s1848_s19 }
  0x1a   : > { %1656 = vmatmul.mubr.msk.bf16.vlgmr.msra.gmra.mxu1 %vm394_vm1, %v351_v5  ;;  %1660 = vmatpush3.bf16.msra.mxu0 %v1826_v3  ;;  %v813_v45 = vld [vmem:[%s341_s23] sm:$0xf]  ;;  %v814_v46 = vld [vmem:[%s341_s23 + $0x4] sm:$0xf]  ;;  %v815_v55 = vld [vmem:[%s341_s23 + $0x8] sm:$0xf]  ;;  %p1856_p2 = scmp.lt.s32.totalorder %s1854_s24, %s1848_s19 }
  0x1b   : > { %1666 = vmatpush3.bf16.msra.mxu1 %v1827_v4  ;;  %1661 = vmatprep.mubr.msk.bf16.mxu0 %vm1927_vm0, %v1926_v1  ;;  %v816_v56 = vld [vmem:[%s341_s23 + $0xc] sm:$0xf]  ;;  %v1576_v63 = vld [vmem:[%s2268_s5 + $0x2] ss:$0 sm:$0xff]  ;;  %s1603_s26 = sshll.u32 %s1916_s30, 7  ;;  %s1450_s30 = scalar_lea.sflag [#allocation5], %s331_s21 }
  0x1c   : > { %1667 = vmatprep.mubr.msk.bf16.mxu1 %vm1927_vm0, %v1926_v1  ;;  %1671 = vmatprep.subr.bf16.mxu0 %v1926_v1  ;;  %s2217_s23 = scalar_lea.hbm %s2271_s8, %s1603_s26  ;;  %p1850_p13 = pnand %p1849_p12, %p2014_p4 }
  0x1d   : > { %1677 = vmatprep.subr.bf16.mxu1 %v1926_v1  ;;  %p1857_p3 = por %p1856_p2, %p1855_p1 }
  0x1e   : > { %p1851_p0 = pneg %p1850_p13 }
  0x20   : > { %p1858_p5 = pnand %p1857_p3, %p1851_p0 }
  0x21   : > { %1662 = vmatmul.mubr.msk.bf16.vlgmr.msra.gmra.mxu0 %vm394_vm1, %v351_v5 }
  0x22   : > { %1668 = vmatmul.mubr.msk.bf16.vlgmr.msra.gmra.mxu1 %vm394_vm1, %v351_v5  ;;  %1672 = vmatpush3.bf16.msra.mxu0 %v1828_v6 }
  0x23   : > { %1673 = vmatprep.mubr.msk.bf16.mxu0 %vm1927_vm0, %v1926_v1  ;;  %1679 = vmatprep.mubr.msk.bf16.mxu1 %vm1927_vm0, %v1926_v1 }
  0x24   : > { %1683 = vmatprep.subr.bf16.mxu0 %v1926_v1  ;;  %1678 = vmatpush3.bf16.msra.mxu1 %v1829_v7  ;;  %v1577_v7 = vld [vmem:[%s2268_s5 + $0x3] ss:$0 sm:$0xff] }
  0x25   : > { %1689 = vmatprep.subr.bf16.mxu1 %v1926_v1 }
  0x29   : > { %1674 = vmatmul.mubr.msk.bf16.vlgmr.msra.gmra.mxu0 %vm394_vm1, %v351_v5 }
  0x2a   : > { %1685 = vmatprep.mubr.msk.bf16.mxu0 %vm1927_vm0, %v1926_v1  ;;  %1680 = vmatmul.mubr.msk.bf16.vlgmr.msra.gmra.mxu1 %vm394_vm1, %v351_v5 }
  0x2b   : > { %1684 = vmatpush3.bf16.msra.mxu0 %v1830_v8  ;;  %1691 = vmatprep.mubr.msk.bf16.mxu1 %vm1927_vm0, %v1926_v1 }
  0x2c   : > { %1695 = vmatprep.subr.bf16.mxu0 %v1926_v1  ;;  %1690 = vmatpush3.bf16.msra.mxu1 %v1831_v9 }
  0x2d   : > { %1701 = vmatprep.subr.bf16.mxu1 %v1926_v1 }
  0x31   : > { %1686 = vmatmul.mubr.msk.bf16.vlgmr.msra.gmra.mxu0 %vm394_vm1, %v351_v5 }
  0x32   : > { %1697 = vmatprep.mubr.msk.bf16.mxu0 %vm1927_vm0, %v1926_v1  ;;  %1692 = vmatmul.mubr.msk.bf16.vlgmr.msra.gmra.mxu1 %vm394_vm1, %v351_v5 }
  0x33   : > { %1703 = vmatprep.mubr.msk.bf16.mxu1 %vm1927_vm0, %v1926_v1 }
  0xd9   : > { %v432_v12 = vpop.f32.mrf.mxu0 }
  0xda   : > { %v478_v13 = vpop.f32.mrf.mxu1  ;;  %v433_v14 = vadd.f32 %v1562_v10, %v432_v12 }
  0xdb   : > { %v479_v15 = vadd.f32 %v1563_v11, %v478_v13  ;;  %v1651_v16 = vpop.f32.mrf.mxu0 }
  0xdc   : > { %v1657_v17 = vpop.f32.mrf.mxu1  ;;  %v796_v18 = vpack.c.bf16 %v433_v14, %v433_v14 }
  0xdd   : > { %v797_v19 = vpack.c.bf16 %v479_v15, %v479_v15  ;;  %v435_v20 = vpop.f32.mrf.mxu0 }
  0xde   : > { %v481_v21 = vpop.f32.mrf.mxu1  ;;  %801 = vst.msk [vmem:[#allocation2] sm:$0xf] %vm800_vm2, %v796_v18 }
  0xdf   : > { %802 = vst.msk [vmem:[#allocation2 + $0x4] sm:$0xf] %vm800_vm2, %v797_v19  ;;  %v1652_v22 = vpop.f32.mrf.mxu0 }
  0xe0   : > { %v1658_v23 = vpop.f32.mrf.mxu1 }
  0xe1   : > { %v524_v26 = vpop.f32.mrf.mxu0 }
  0xe2   : > { %v570_v27 = vpop.f32.mrf.mxu1  ;;  %v525_v28 = vadd.f32 %v1564_v24, %v524_v26 }
  0xe3   : > { %v571_v29 = vadd.f32 %v1565_v25, %v570_v27  ;;  %v1663_v30 = vpop.f32.mrf.mxu0 }
  0xe4   : > { %v1669_v31 = vpop.f32.mrf.mxu1  ;;  %v798_v32 = vpack.c.bf16 %v525_v28, %v525_v28 }
  0xe5   : > { %v799_v33 = vpack.c.bf16 %v571_v29, %v571_v29  ;;  %v527_v34 = vpop.f32.mrf.mxu0  ;;  %v817_v36 = vld [vmem:[#allocation2] sm:$0xf] }
  0xe6   : > { %v573_v35 = vpop.f32.mrf.mxu1  ;;  %v818_v37 = vld [vmem:[#allocation2 + $0x4] sm:$0xf]  ;;  %803 = vst.msk [vmem:[#allocation2 + $0x8] sm:$0xf] %vm800_vm2, %v798_v32  ;;  %v830_v38 = vsel %vm825_vm3, %v817_v36, 0 }
  0xe7   : > { %804 = vst.msk [vmem:[#allocation2 + $0xc] sm:$0xf] %vm800_vm2, %v799_v33  ;;  %v876_v39 = vsel %vm825_vm3, %v818_v37, 0  ;;  %v1664_v40 = vpop.f32.mrf.mxu0  ;;  %1696 = vmatpush3.bf16.xpose.msra.mxu0 %v830_v38 }
  0xe8   : > { %v1670_v41 = vpop.f32.mrf.mxu1  ;;  %1702 = vmatpush3.bf16.xpose.msra.mxu1 %v876_v39  ;;  %1707 = vmatprep.subr.bf16.mxu0 %v1926_v1 }
  0xe9   : > { %1713 = vmatprep.subr.bf16.mxu1 %v1926_v1  ;;  %v652_v43 = vpop.f32.mrf.mxu0 }
  0xea   : > { %v653_v44 = vadd.f32 %v1574_v42, %v652_v43  ;;  %v698_v60 = vpop.f32.mrf.mxu1 }
  0xeb   : > { %v1675_v47 = vpop.f32.mrf.mxu0  ;;  %v699_v61 = vadd.f32 %v1575_v59, %v698_v60 }
  0xec   : > { %v805_v48 = vpack.c.bf16 %v653_v44, %v653_v44  ;;  %v1681_v62 = vpop.f32.mrf.mxu1 }
  0xed   : > { %v819_v49 = vld [vmem:[#allocation2 + $0x8] sm:$0xf]  ;;  %v655_v51 = vpop.f32.mrf.mxu0  ;;  %v806_v0 = vpack.c.bf16 %v699_v61, %v699_v61 }
  0xee   : > { %v820_v50 = vld [vmem:[#allocation2 + $0xc] sm:$0xf]  ;;  %1698 = vmatmul.mubr.msk.bf16.vlgmr.msra.gmra.mxu0 %vm825_vm3, %v813_v45  ;;  %v922_v52 = vsel %vm825_vm3, %v819_v49, 0  ;;  %809 = vst.msk [vmem:[#allocation3] sm:$0xf] %vm800_vm2, %v805_v48  ;;  %v701_v2 = vpop.f32.mrf.mxu1 }
  0xef   : > { %1704 = vmatmul.mubr.msk.bf16.vlgmr.msra.gmra.mxu1 %vm825_vm3, %v814_v46  ;;  %v968_v53 = vsel %vm825_vm3, %v820_v50, 0  ;;  %1708 = vmatpush3.bf16.xpose.msra.mxu0 %v922_v52  ;;  %v1676_v54 = vpop.f32.mrf.mxu0  ;;  %810 = vst.msk [vmem:[#allocation3 + $0x4] sm:$0xf] %vm800_vm2, %v806_v0 }
  0xf0   : > { %1714 = vmatpush3.bf16.xpose.msra.mxu1 %v968_v53  ;;  %1709 = vmatprep.mubr.msk.bf16.mxu0 %vm1927_vm0, %v1926_v1  ;;  %v1682_v5 = vpop.f32.mrf.mxu1 }
  0xf1   : > { %1715 = vmatprep.mubr.msk.bf16.mxu1 %vm1927_vm0, %v1926_v1  ;;  %1719 = vmatprep.subr.bf16.mxu0 %v1926_v1  ;;  %v744_v3 = vpop.f32.mrf.mxu0 }
  0xf2   : > { %1725 = vmatprep.subr.bf16.mxu1 %v1926_v1  ;;  %v745_v4 = vadd.f32 %v1576_v63, %v744_v3  ;;  %v790_v10 = vpop.f32.mrf.mxu1 }
  0xf3   : > { %v1687_v6 = vpop.f32.mrf.mxu0  ;;  %v791_v11 = vadd.f32 %v1577_v7, %v790_v10 }
  0xf4   : > { %v807_v8 = vpack.c.bf16 %v745_v4, %v745_v4  ;;  %v1693_v13 = vpop.f32.mrf.mxu1  ;;  %v1244_v4 = vld [vmem:[%s2269_s6] sm:$0xf]  ;;  %v1594_v6 = vld [vmem:[%s2269_s6 + $0x4] sm:$0xf] }
  0xf5   : > { %v821_v57 = vld [vmem:[#allocation3] sm:$0xf]  ;;  %v747_v9 = vpop.f32.mrf.mxu0  ;;  %v808_v14 = vpack.c.bf16 %v791_v11, %v791_v11  ;;  %v1298_v5 = vsel %vm1053_vm4, %v1244_v4, 0  ;;  %v1252_v7 = vsel %vm1053_vm4, %v1594_v6, 0 }
  0xf6   : > { %1710 = vmatmul.mubr.msk.bf16.vlgmr.msra.gmra.mxu0 %vm825_vm3, %v815_v55  ;;  %v1055_v58 = vsel %vm1053_vm4, %v821_v57, 0  ;;  %811 = vst.msk [vmem:[#allocation3 + $0x8] sm:$0xf] %vm800_vm2, %v807_v8  ;;  %v793_v15 = vpop.f32.mrf.mxu1  ;;  %v822_v17 = vld [vmem:[#allocation3 + $0x4] sm:$0xf] }
  0xf7   : > { %1716 = vmatmul.mubr.msk.bf16.vlgmr.msra.gmra.mxu1 %vm825_vm3, %v816_v56  ;;  %1720 = vmatpush3.bf16.msra.mxu0 %v1055_v58  ;;  %v1688_v12 = vpop.f32.mrf.mxu0  ;;  %812 = vst.msk [vmem:[#allocation3 + $0xc] sm:$0xf] %vm800_vm2, %v808_v14  ;;  %v1101_v18 = vsel %vm1053_vm4, %v822_v17, 0  ;;  %v1599_v14 = vld [vmem:[%s2269_s6 + $0xc] sm:$0xf] }
  0xf8   : > { %1721 = vmatprep.mubr.msk.bf16.mxu0 %vm1927_vm0, %v1926_v1  ;;  %1731 = vmatprep.subr.bf16.mxu0 %v1926_v1  ;;  %v1694_v16 = vpop.f32.mrf.mxu1 }
  0xf9   : > { %1727 = vmatprep.mubr.msk.bf16.mxu1 %vm1927_vm0, %v1926_v1  ;;  %1726 = vmatpush3.bf16.msra.mxu1 %v1101_v18  ;;  %v1397_v18 = vsel %vm1053_vm4, %v1599_v14, 0 }
  0xfa   : > { %1737 = vmatprep.subr.bf16.mxu1 %v1926_v1 }
  0xfd   : > { %v823_v52 = vld [vmem:[#allocation3 + $0x8] sm:$0xf] }
  0xfe   : > { %v1147_v55 = vsel %vm1053_vm4, %v823_v52, 0  ;;  %v824_v57 = vld [vmem:[#allocation3 + $0xc] sm:$0xf] }
  0xff   : > { %v1193_v60 = vsel %vm1053_vm4, %v824_v57, 0 }
 0x1ae   : > { %v866_v19 = vpop.f32.mrf.mxu0 }
 0x1af   : > { %v912_v20 = vpop.f32.mrf.mxu1  ;;  %v1010_v21 = vsel %vm825_vm3, %v866_v19, -inf }
 0x1b0   : > { %1011 = vmax.xlane.f32.xlu0 %v1010_v21  ;;  %v1699_v23 = vpop.f32.mrf.mxu0  ;;  %v1013_v24 = vsel %vm825_vm3, %v912_v20, -inf }
 0x1b1   : > { %v1705_v22 = vpop.f32.mrf.mxu1 }
 0x1b2   : > { %v869_v25 = vpop.f32.mrf.mxu0  ;;  %v1597_v22 = vld [vmem:[%s2269_s6 + $0x8] sm:$0xf] }
 0x1b3   : > { %v915_v26 = vpop.f32.mrf.mxu1 }
 0x1b4   : > { %1014 = vmax.xlane.f32.xlu0 %v1013_v24  ;;  %v1700_v28 = vpop.f32.mrf.mxu0 }
 0x1b5   : > { %v1706_v27 = vpop.f32.mrf.mxu1 }
 0x1b6   : > { %v958_v29 = vpop.f32.mrf.mxu0  ;;  %v1347_v27 = vsel %vm1053_vm4, %v1597_v22, 0 }
 0x1b7   : > { %v1004_v30 = vpop.f32.mrf.mxu1  ;;  %v1016_v31 = vsel %vm825_vm3, %v958_v29, -inf }
 0x1b8   : > { %1017 = vmax.xlane.f32.xlu1 %v1016_v31  ;;  %v1711_v32 = vpop.f32.mrf.mxu0  ;;  %v1019_v34 = vsel %vm825_vm3, %v1004_v30, -inf }
 0x1b9   : > { %v1717_v33 = vpop.f32.mrf.mxu1 }
 0x1ba   : > { %v961_v35 = vpop.f32.mrf.mxu0 }
 0x1bb   : > { %v1007_v36 = vpop.f32.mrf.mxu1 }
 0x1bc   : > { %1020 = vmax.xlane.f32.xlu1 %v1019_v34  ;;  %v1712_v37 = vpop.f32.mrf.mxu0 }
 0x1bd   : > { %v1718_v38 = vpop.f32.mrf.mxu1 }
 0x239   : > { %v1012_v39 = vpop.xlane.xlu0 %1011 }
 0x23a   : > { %v1022_v40 = vsub.f32 %v866_v19, %v1012_v39 }
 0x23c   : > { %v1026_v41 = vmul.f32 1.442695, %v1022_v40 }
 0x23d   : > { %v1015_v42 = vpop.xlane.xlu0 %1014 }
 0x23e   : > { %1832 = vpow2.f32 %v1026_v41  ;;  %v1023_v43 = vsub.f32 %v912_v20, %v1015_v42 }
 0x240   : > { %v1028_v44 = vmul.f32 1.442695, %v1023_v43 }
 0x241   : > { %v1018_v45 = vpop.xlane.xlu1 %1017 }
 0x242   : > { %1834 = vpow2.f32 %v1028_v44  ;;  %v1024_v46 = vsub.f32 %v958_v29, %v1018_v45 }
 0x244   : > { %v1030_v47 = vmul.f32 1.442695, %v1024_v46 }
 0x245   : > { %v1021_v48 = vpop.xlane.xlu1 %1020 }
 0x246   : > { %1836 = vpow2.f32 %v1030_v47  ;;  %v1025_v49 = vsub.f32 %v1004_v30, %v1021_v48 }
 0x248   : > { %v1032_v50 = vmul.f32 1.442695, %v1025_v49 }
 0x24a   : > { %1838 = vpow2.f32 %v1032_v50 }
 0x24b   : > { %v1833_v51 = vpop.eup %1832 }
 0x24c   : > { %v1034_v53 = vsel %vm825_vm3, %v1833_v51, 0.0  ;;  %v1046_v54 = vpack.c.bf16 %v1833_v51, %v1833_v51 }
 0x24d   : > { %1035 = vadd.xlane.f32.xlu1 %v1034_v53 }
 0x24e   : > { %1722 = vmatmul.mubr.msk.bf16.vlgmr.msra.gmra.mxu0 %vm825_vm3, %v1046_v54 }
 0x24f   : > { %v1835_v56 = vpop.eup %1834  ;;  %1732 = vmatpush3.bf16.msra.mxu0 %v1147_v55  ;;  %1733 = vmatprep.mubr.msk.bf16.mxu0 %vm1927_vm0, %v1926_v1  ;;  %v1601_v55 = vld [vmem:[%s2270_s7] ss:$0 sm:$0xff] }
 0x250   : > { %v1037_v58 = vsel %vm825_vm3, %v1835_v56, 0.0  ;;  %v1047_v59 = vpack.c.bf16 %v1835_v56, %v1835_v56  ;;  %1743 = vmatprep.subr.bf16.mxu0 %v1926_v1 }
 0x251   : > { %1038 = vadd.xlane.f32.xlu0 %v1037_v58 }
 0x252   : > { %1728 = vmatmul.mubr.msk.bf16.vlgmr.msra.gmra.mxu1 %vm825_vm3, %v1047_v59 }
 0x253   : > { %v1837_v61 = vpop.eup %1836  ;;  %1738 = vmatpush3.bf16.msra.mxu1 %v1193_v60  ;;  %1739 = vmatprep.mubr.msk.bf16.mxu1 %vm1927_vm0, %v1926_v1 }
 0x254   : > { %v1040_v62 = vsel %vm825_vm3, %v1837_v61, 0.0  ;;  %v1048_v63 = vpack.c.bf16 %v1837_v61, %v1837_v61  ;;  %1749 = vmatprep.subr.bf16.mxu1 %v1926_v1 }
 0x255   : > { %1041 = vadd.xlane.f32.xlu0 %v1040_v62 }
 0x256   : > { %1734 = vmatmul.mubr.msk.bf16.vlgmr.msra.gmra.mxu0 %vm825_vm3, %v1048_v63 }
 0x257   : > { %v1839_v0 = vpop.eup %1838  ;;  %1745 = vmatprep.mubr.msk.bf16.mxu0 %vm1927_vm0, %v1926_v1  ;;  %1744 = vmatpush3.bf16.msra.mxu0 %v1252_v7 }
 0x258   : > { %v1043_v2 = vsel %vm825_vm3, %v1839_v0, 0.0  ;;  %v1049_v3 = vpack.c.bf16 %v1839_v0, %v1839_v0  ;;  %1755 = vmatprep.subr.bf16.mxu0 %v1926_v1 }
 0x259   : > { %1044 = vadd.xlane.f32.xlu1 %v1043_v2 }
 0x25a   : > { %1740 = vmatmul.mubr.msk.bf16.vlgmr.msra.gmra.mxu1 %vm825_vm3, %v1049_v3 }
 0x25b   : > { %1751 = vmatprep.mubr.msk.bf16.mxu1 %vm1927_vm0, %v1926_v1  ;;  %1750 = vmatpush3.bf16.msra.mxu1 %v1298_v5 }
 0x25c   : > { %1761 = vmatprep.subr.bf16.mxu1 %v1926_v1 }
 0x2d6   : > { %v1036_v8 = vpop.xlane.xlu1 %1035 }
 0x2d7   : > { %1840 = vrcp.f32 %v1036_v8 }
 0x2da   : > { %v1039_v9 = vpop.xlane.xlu0 %1038 }
 0x2db   : > { %1842 = vrcp.f32 %v1039_v9 }
 0x2de   : > { %v1042_v10 = vpop.xlane.xlu0 %1041 }
 0x2df   : > { %1844 = vrcp.f32 %v1042_v10 }
 0x2e2   : > { %v1045_v11 = vpop.xlane.xlu1 %1044 }
 0x2e3   : > { %1846 = vrcp.f32 %v1045_v11 }
 0x2e4   : > { %v1841_v12 = vpop.eup %1840 }
 0x2e8   : > { %v1843_v19 = vpop.eup %1842 }
 0x2ec   : > { %v1845_v30 = vpop.eup %1844 }
 0x2f0   : > { %v1847_v34 = vpop.eup %1846 }
 0x30e   : > { %v1091_v13 = vpop.f32.mrf.mxu0 }
 0x30f   : > { %v1239_v15 = vmul.f32 %v1841_v12, %v1091_v13 }
 0x310   : > { %v1723_v16 = vpop.f32.mrf.mxu0 }
 0x311   : > { %v1243_v17 = vpack.c.bf16 %v1239_v15, %v1239_v15 }
 0x312   : > { %v1094_v20 = vpop.f32.mrf.mxu0  ;;  %v1137_v21 = vpop.f32.mrf.mxu1 }
 0x313   : > { %v1240_v23 = vmul.f32 %v1843_v19, %v1137_v21  ;;  %1752 = vmatmul.mubr.msk.bf16.vlgmr.msra.gmra.mxu1 %vm825_vm3, %v1243_v17 }
 0x314   : > { %v1724_v24 = vpop.f32.mrf.mxu0  ;;  %v1729_v25 = vpop.f32.mrf.mxu1  ;;  %1762 = vmatpush3.bf16.msra.mxu1 %v1397_v18  ;;  %1763 = vmatprep.mubr.msk.bf16.mxu1 %vm1927_vm0, %v1926_v1 }
 0x315   : > { %v1245_v26 = vpack.c.bf16 %v1240_v23, %v1240_v23 }
 0x316   : > { %v1140_v28 = vpop.f32.mrf.mxu1  ;;  %v1183_v29 = vpop.f32.mrf.mxu0 }
 0x317   : > { %1746 = vmatmul.mubr.msk.bf16.vlgmr.msra.gmra.mxu0 %vm825_vm3, %v1245_v26  ;;  %v1241_v33 = vmul.f32 %v1845_v30, %v1183_v29 }
 0x318   : > { %v1730_v31 = vpop.f32.mrf.mxu1  ;;  %v1735_v32 = vpop.f32.mrf.mxu0  ;;  %1756 = vmatpush3.bf16.msra.mxu0 %v1347_v27  ;;  %1757 = vmatprep.mubr.msk.bf16.mxu0 %vm1927_vm0, %v1926_v1 }
 0x319   : > { %v1340_v40 = vpack.c.bf16 %v1241_v33, %v1241_v33 }
 0x31a   : > { %v1186_v35 = vpop.f32.mrf.mxu0  ;;  %v1229_v36 = vpop.f32.mrf.mxu1 }
 0x31b   : > { %v1242_v37 = vmul.f32 %v1847_v34, %v1229_v36 }
 0x31c   : > { %v1736_v38 = vpop.f32.mrf.mxu0  ;;  %v1741_v39 = vpop.f32.mrf.mxu1 }
 0x31d   : > { %v1390_v41 = vpack.c.bf16 %v1242_v37, %v1242_v37 }
 0x31e   : > { %v1232_v42 = vpop.f32.mrf.mxu1 }
 0x31f   : > { %1758 = vmatmul.mubr.msk.bf16.vlgmr.msra.gmra.mxu0 %vm825_vm3, %v1340_v40  ;;  %1764 = vmatmul.mubr.msk.bf16.vlgmr.msra.gmra.mxu1 %vm825_vm3, %v1390_v41 }
 0x320   : > { %v1742_v43 = vpop.f32.mrf.mxu1 }
 0x3d3   : > { %v1334_v44 = vpop.f32.mrf.mxu1 }
 0x3d5   : > { %v1753_v45 = vpop.f32.mrf.mxu1 }
 0x3d7   : > { %v1288_v1 = vpop.f32.mrf.mxu0  ;;  %v1337_v46 = vpop.f32.mrf.mxu1 }
 0x3d8   : > { %v1335_v51 = vadd.f32 %v1334_v44, %v1288_v1 }
 0x3d9   : > { %v1747_v47 = vpop.f32.mrf.mxu0  ;;  %v1754_v48 = vpop.f32.mrf.mxu1 }
 0x3db   : > { %v1291_v49 = vpop.f32.mrf.mxu0 }
 0x3dd   : > { %v1748_v50 = vpop.f32.mrf.mxu0 }
 0x3df   : > { %v1383_v52 = vpop.f32.mrf.mxu0  ;;  %v1433_v53 = vpop.f32.mrf.mxu1 }
 0x3e0   : > { %v1389_v54 = vadd.f32 %v1383_v52, %v1335_v51 }
 0x3e1   : > { %v1759_v56 = vpop.f32.mrf.mxu0  ;;  %v1765_v57 = vpop.f32.mrf.mxu1 }
 0x3e2   : > { %v1439_v58 = vadd.f32 %v1433_v53, %v1389_v54 }
 0x3e3   : > { %v1386_v59 = vpop.f32.mrf.mxu0  ;;  %v1436_v60 = vpop.f32.mrf.mxu1 }
 0x3e4   : > { %v1447_v61 = vadd.f32 %v1601_v55, %v1439_v58 }
 0x3e5   : > { %v1760_v62 = vpop.f32.mrf.mxu0  ;;  %v1766_v63 = vpop.f32.mrf.mxu1 }
 0x3e6   : > { %1448 = vst [vmem:[%s333_s11] sm:$0xff] %v1447_v61 }
 0x3e7   : > { %1861 = shalt.err (!%p1858_p5)
}
 0x3e8   : > { %s1862_s25 = scalar_lea.hbm %s2217_s23, 128  ;;  %s1866_s11 = scalar_lea.hbm %s2271_s8, 256 }
 0x3e9   : > { %p1863_p6 = scmp.ne.s32.totalorder %s2217_s23, %s1862_s25  ;;  %p1867_p10 = scmp.lt.s32.totalorder %s2217_s23, %s2271_s8 }
 0x3ea   : > { %p1868_p11 = scmp.lt.s32.totalorder %s1866_s11, %s1862_s25 }
 0x3eb   : > { %p1864_p7 = pnand %p1863_p6, %p2014_p4 }
 0x3ec   : > { %p1869_p12 = por %p1868_p11, %p1867_p10 }
 0x3ed   : > { %p1865_p9 = pneg %p1864_p7 }
 0x3ef   : > { %p1870_p13 = pnand %p1869_p12, %p1865_p9 }
 0x3f1   : > { %1873 = shalt.err (!%p1870_p13)
}
 0x3f2   : > { %1767 = dma.vmem_to_hbm [thread:$0]  (%p2014_p4), %s2219_s12, 128, %s2217_s23, %s1450_s30  }
 0x3f3 PF: > { %p1773_p0 = scmp.ge.s32.totalorder %s1924_s10, 2  ;;  %s1476_s19 = sand.u32 1, %s1904_s27  }
 0x3f4   : > { %s1477_s20 = scalar_lea.sflag [#allocation5], %s1476_s19 }
 0x3f5   : > { %p1770_p1 = pnand %p1773_p0, %p2021_p8 }
 0x3f7   : > { %p1771_p2 = pneg %p1770_p1 }
 0x3f9   : > { %1899 = dma.done.wait (%p1771_p2), %s1477_s20, 128  }
 0x3fa   : > { %1901 = vsyncadd (%p1771_p2), %s1477_s20, 4294967168  ;;  %s21_s10 = sadd.s32 1, %s1924_s10   ;;  %s2274_s27 = smov %s1908_s28 }
 0x3fb   : > { %p18_p3 = scmp.ge.s32.totalorder %s21_s10, 4   ;;  %s2275_s28 = smov %s1912_s29 }
 0x3fc   : > { %s2276_s29 = smov %s2027_s18  ;;  %s2277_s30 = smov %s1920_s9 }
 0x3fd   : > { %s2278_s9 = smov %s2280_s13  ;;  %20 = sbr.rel (!%p18_p3) target bundleno = 4 (0x4), region = 97 }
 0x402   :  { %1482 = vsyncpa [#allocation5], 1 }
 0x403   :  { %1484 = vsyncpa [#allocation5 + $0x1], 1 }

// kernel: tpu_custom_call.1
= control target key start
LH: loop header
LB: loop body
LE: loop exit
PB: predicated region body
PF: predicated region fallthrough
CT: control target
= control target key end

     0   :  { %13 = vsyncpa [#allocation5], 0  ;;  %s2260_s0 = inlined_call_operand.vmem [shape: bf16[2,4,8,8], index: 0, kind: input, shape index: {}]   ;;  %s2261_s1 = inlined_call_operand.vmem [shape: bf16[2,8,16], index: 1, kind: input, shape index: {}]   ;;  %s2262_s2 = inlined_call_operand.vmem [shape: bf16[4,16,8], index: 2, kind: input, shape index: {}]   ;;  %s2263_s3 = inlined_call_operand.vmem [shape: bf16[4,16,8], index: 3, kind: input, shape index: {}]   ;;  %s2264_s4 = inlined_call_operand.vmem [shape: f32[4,1,8], index: 4, kind: input, shape index: {}]   ;;  %s2265_s5 = inlined_call_operand.vmem [shape: f32[4,1,8], index: 5, kind: input, shape index: {}]   ;;  %s2266_s6 = inlined_call_operand.vmem [shape: bf16[4,8,128], index: 6, kind: input, shape index: {}]   ;;  %s2267_s7 = inlined_call_operand.vmem [shape: f32[1,128], index: 7, kind: input, shape index: {}]   ;;  %s2268_s8 = inlined_call_operand.hbm [shape: f32[2,8,128], index: 8, kind: output, shape index: {}]  }
   0x1   :  { %15 = vsyncpa [#allocation5 + $0x1], 0  ;;  %s1971_s27 = smov 0   ;;  %s1973_s28 = smov 0  }
   0x2   :  { %s1975_s29 = smov 0   ;;  %s1977_s30 = smov 0  }
   0x3   :  { %s1979_s9 = smov 0   ;;  %s1981_s10 = smov 0  }
   0x4 LB: > { %s1550_s11 = sadd.s32 4294967295, %s1921_s10   ;;  %s1551_s12 = sadd.s32 4294967294, %s1921_s10   ;;  %s1921_s10 = sphi %s1981_s10, %s21_s10   ;;  %s1917_s9 = sphi %s1979_s9, %s2275_s9   ;;  %s1913_s30 = sphi %s1977_s30, %s2274_s30   ;;  %s1909_s29 = sphi %s1975_s29, %s2273_s29   ;;  %s1905_s28 = sphi %s1973_s28, %s2272_s28   ;;  %s1901_s27 = sphi %s1971_s27, %s2271_s27  }
   0x5   : > { %s33_s13 = sadd.s32 1, %s1917_s9  ;;  %s222_s14 = sadd.s32 1, %s1909_s29 }
   0x6   : > { %p35_p0 = scmp.ge.s32.totalorder %s33_s13, 2  ;;  %p232_p1 = scmp.ne.s32.totalorder %s1909_s29, %s1905_s28 }
   0x7   : > { %p233_p2 = scmp.eq.s32.totalorder %s1550_s11, 1  ;;  %p238_p3 = scmp.ne.s32.totalorder %s1905_s28, %s1901_s27 }
   0x8   : > { %s2277_s13 = smov (%p35_p0, %s33_s13), 0  ;;  %p239_p5 = scmp.eq.s32.totalorder %s1551_s12, 1 }
   0x9   : > { %p2011_p4 = por %p233_p2, %p232_p1  ;;  %s217_s16 = ssub.s32 %s1917_s9, %s2277_s13 }
   0xa   : > { %p1554_p6 = scmp.ge.s32.totalorder %s1921_s10, 1  ;;  %p220_p7 = scmp.eq.s32.totalorder %s217_s16, 0 }
   0xb   : > { %p2018_p8 = por %p239_p5, %p238_p3  ;;  %p293_p9 = scmp.lt.s32.totalorder %s1921_s10, 3 }
   0xc   : > { %s2024_s18 = scalar_select %p220_p7, %s1909_s29, %s222_s14  }
   0xd   : > { %p294_p10 = pnand %p1554_p6, %p293_p9 }
   0xe   : > { %p334_p11 = scmp.lt.s32.totalorder (!%p294_p10), %s1913_s30, 1  ;;  %s331_s21 = sand.u32 (!%p294_p10), 1, %s1905_s28  }
   0xf   : > { %297 = sbr.rel (%p294_p10) target bundleno = 1011 (0x3f3), region = 52  ;;  %s1555_s22 = sshll.u32 (!%p294_p10), %s331_s21, 3 }
  0x10   : > { %s333_s11 = scalar_lea.vmem (!%p294_p10), [#allocation4], %s1555_s22  ;;  %s1925_s20 = smov (!%p294_p10), [#allocation4]  }
  0x11   : > { %s1464_s12 = sshll.u32 (!%p294_p10), %s333_s11, 4  ;;  %s1849_s22 = sshll.u32 (!%p294_p10), %s1925_s20, 4  ;;  %s2216_s12 = int_to_ptr.vmem [resolvable:$true] %s1464_s12  ;;  %s1850_s22 = int_to_ptr.vmem [resolvable:$false] %s1849_s22 }
  0x12   : > { %s1851_s24 = scalar_lea.vmem (!%p294_p10), %s1850_s22, 256  ;;  %p1852_p1 = scmp.lt.s32.totalorder (!%p294_p10), %s2216_s12, %s1850_s22 }
  0x14   : > { %v1821_v0 = vld [vmem:[%s2262_s2] sm:$0xff]   ;;  %v1923_v1 = vmov 0.0   ;;  %v1822_v2 = vld [vmem:[%s2262_s2 + $0x8] sm:$0xff]   ;;  %vm1924_vm0 = vmmov 0   ;;  %s2040_s23 = scalar_select %p334_p11, %s1913_s30, 1  ;;  %vm394_vm1 = vcmask 130048  }
  0x15   : > { %1644 = vmatprep.subr.bf16.mxu0 %v1923_v1  ;;  %1650 = vmatprep.subr.bf16.mxu1 %v1923_v1  ;;  %v1823_v3 = vld [vmem:[%s2262_s2 + $0x10] sm:$0xff]   ;;  %v1824_v4 = vld [vmem:[%s2262_s2 + $0x18] sm:$0xff]   ;;  %v1825_v6 = vld [vmem:[%s2263_s3] sm:$0xff]   ;;  %vm800_vm2 = vcmask 60416   ;;  %vm825_vm3 = vcmask 64512   ;;  %vm1053_vm4 = vcmask 1043456  }
  0x16   : > { %1645 = vmatpush3.bf16.msra.mxu0 %v1821_v0  ;;  %1646 = vmatprep.mubr.msk.bf16.mxu0 %vm1924_vm0, %v1923_v1  ;;  %s1558_s26 = sshll.u32 %s2040_s23, 2  ;;  %v1826_v7 = vld [vmem:[%s2263_s3 + $0x8] sm:$0xff]   ;;  %v1827_v8 = vld [vmem:[%s2263_s3 + $0x10] sm:$0xff]   ;;  %v1828_v9 = vld [vmem:[%s2263_s3 + $0x18] sm:$0xff]  }
  0x17   : > { %1651 = vmatpush3.bf16.msra.mxu1 %v1822_v2  ;;  %1652 = vmatprep.mubr.msk.bf16.mxu1 %vm1924_vm0, %v1923_v1  ;;  %s345_s19 = scalar_lea.vmem %s2261_s1, %s1558_s26  ;;  %v1559_v10 = vld [vmem:[%s2264_s4] ss:$0 sm:$0xff]  ;;  %v1560_v11 = vld [vmem:[%s2264_s4 + $0x1] ss:$0 sm:$0xff]  ;;  %v1561_v24 = vld [vmem:[%s2264_s4 + $0x2] ss:$0 sm:$0xff] }
  0x18   : > { %1656 = vmatprep.subr.bf16.mxu0 %v1923_v1  ;;  %1662 = vmatprep.subr.bf16.mxu1 %v1923_v1  ;;  %v351_v5 = vld [vmem:[%s345_s19] sm:$0xf]  ;;  %s1603_s26 = sshll.u32 %s2040_s23, 4  ;;  %s1845_s19 = scalar_lea.vmem %s2216_s12, 128 }
  0x19   : > { %1647 = vmatmul.mubr.msk.bf16.vlgmr.msra.gmra.mxu0 %vm394_vm1, %v351_v5  ;;  %v1562_v25 = vld [vmem:[%s2264_s4 + $0x3] ss:$0 sm:$0xff]  ;;  %v1571_v42 = vld [vmem:[%s2265_s5] ss:$0 sm:$0xff]  ;;  %s341_s23 = scalar_lea.vmem %s2260_s0, %s1603_s26  ;;  %v1572_v59 = vld [vmem:[%s2265_s5 + $0x1] ss:$0 sm:$0xff]  ;;  %p1846_p12 = scmp.ne.s32.totalorder %s2216_s12, %s1845_s19 }
  0x1a   : > { %1653 = vmatmul.mubr.msk.bf16.vlgmr.msra.gmra.mxu1 %vm394_vm1, %v351_v5  ;;  %1657 = vmatpush3.bf16.msra.mxu0 %v1823_v3  ;;  %v813_v45 = vld [vmem:[%s341_s23] sm:$0xf]  ;;  %v814_v46 = vld [vmem:[%s341_s23 + $0x4] sm:$0xf]  ;;  %v815_v55 = vld [vmem:[%s341_s23 + $0x8] sm:$0xf]  ;;  %p1853_p2 = scmp.lt.s32.totalorder %s1851_s24, %s1845_s19 }
  0x1b   : > { %1663 = vmatpush3.bf16.msra.mxu1 %v1824_v4  ;;  %1658 = vmatprep.mubr.msk.bf16.mxu0 %vm1924_vm0, %v1923_v1  ;;  %v816_v56 = vld [vmem:[%s341_s23 + $0xc] sm:$0xf]  ;;  %v1573_v63 = vld [vmem:[%s2265_s5 + $0x2] ss:$0 sm:$0xff]  ;;  %s1600_s26 = sshll.u32 %s1913_s30, 7  ;;  %s1450_s30 = scalar_lea.sflag [#allocation5], %s331_s21 }
  0x1c   : > { %1664 = vmatprep.mubr.msk.bf16.mxu1 %vm1924_vm0, %v1923_v1  ;;  %1668 = vmatprep.subr.bf16.mxu0 %v1923_v1  ;;  %s2214_s23 = scalar_lea.hbm %s2268_s8, %s1600_s26  ;;  %p1847_p13 = pnand %p1846_p12, %p2011_p4 }
  0x1d   : > { %1674 = vmatprep.subr.bf16.mxu1 %v1923_v1  ;;  %p1854_p3 = por %p1853_p2, %p1852_p1 }
  0x1e   : > { %p1848_p0 = pneg %p1847_p13 }
  0x20   : > { %p1855_p5 = pnand %p1854_p3, %p1848_p0 }
  0x21   : > { %1659 = vmatmul.mubr.msk.bf16.vlgmr.msra.gmra.mxu0 %vm394_vm1, %v351_v5 }
  0x22   : > { %1665 = vmatmul.mubr.msk.bf16.vlgmr.msra.gmra.mxu1 %vm394_vm1, %v351_v5  ;;  %1669 = vmatpush3.bf16.msra.mxu0 %v1825_v6 }
  0x23   : > { %1670 = vmatprep.mubr.msk.bf16.mxu0 %vm1924_vm0, %v1923_v1  ;;  %1676 = vmatprep.mubr.msk.bf16.mxu1 %vm1924_vm0, %v1923_v1 }
  0x24   : > { %1680 = vmatprep.subr.bf16.mxu0 %v1923_v1  ;;  %1675 = vmatpush3.bf16.msra.mxu1 %v1826_v7  ;;  %v1574_v7 = vld [vmem:[%s2265_s5 + $0x3] ss:$0 sm:$0xff] }
  0x25   : > { %1686 = vmatprep.subr.bf16.mxu1 %v1923_v1 }
  0x29   : > { %1671 = vmatmul.mubr.msk.bf16.vlgmr.msra.gmra.mxu0 %vm394_vm1, %v351_v5 }
  0x2a   : > { %1682 = vmatprep.mubr.msk.bf16.mxu0 %vm1924_vm0, %v1923_v1  ;;  %1677 = vmatmul.mubr.msk.bf16.vlgmr.msra.gmra.mxu1 %vm394_vm1, %v351_v5 }
  0x2b   : > { %1681 = vmatpush3.bf16.msra.mxu0 %v1827_v8  ;;  %1688 = vmatprep.mubr.msk.bf16.mxu1 %vm1924_vm0, %v1923_v1 }
  0x2c   : > { %1692 = vmatprep.subr.bf16.mxu0 %v1923_v1  ;;  %1687 = vmatpush3.bf16.msra.mxu1 %v1828_v9 }
  0x2d   : > { %1698 = vmatprep.subr.bf16.mxu1 %v1923_v1 }
  0x31   : > { %1683 = vmatmul.mubr.msk.bf16.vlgmr.msra.gmra.mxu0 %vm394_vm1, %v351_v5 }
  0x32   : > { %1694 = vmatprep.mubr.msk.bf16.mxu0 %vm1924_vm0, %v1923_v1  ;;  %1689 = vmatmul.mubr.msk.bf16.vlgmr.msra.gmra.mxu1 %vm394_vm1, %v351_v5 }
  0x33   : > { %1700 = vmatprep.mubr.msk.bf16.mxu1 %vm1924_vm0, %v1923_v1 }
  0xd9   : > { %v432_v12 = vpop.f32.mrf.mxu0 }
  0xda   : > { %v478_v13 = vpop.f32.mrf.mxu1  ;;  %v433_v14 = vadd.f32 %v1559_v10, %v432_v12 }
  0xdb   : > { %v479_v15 = vadd.f32 %v1560_v11, %v478_v13  ;;  %v1648_v16 = vpop.f32.mrf.mxu0 }
  0xdc   : > { %v1654_v17 = vpop.f32.mrf.mxu1  ;;  %v796_v18 = vpack.c.bf16 %v433_v14, %v433_v14 }
  0xdd   : > { %v797_v19 = vpack.c.bf16 %v479_v15, %v479_v15  ;;  %v435_v20 = vpop.f32.mrf.mxu0 }
  0xde   : > { %v481_v21 = vpop.f32.mrf.mxu1  ;;  %801 = vst.msk [vmem:[#allocation2] sm:$0xf] %vm800_vm2, %v796_v18 }
  0xdf   : > { %802 = vst.msk [vmem:[#allocation2 + $0x4] sm:$0xf] %vm800_vm2, %v797_v19  ;;  %v1649_v22 = vpop.f32.mrf.mxu0 }
  0xe0   : > { %v1655_v23 = vpop.f32.mrf.mxu1 }
  0xe1   : > { %v524_v26 = vpop.f32.mrf.mxu0 }
  0xe2   : > { %v570_v27 = vpop.f32.mrf.mxu1  ;;  %v525_v28 = vadd.f32 %v1561_v24, %v524_v26 }
  0xe3   : > { %v571_v29 = vadd.f32 %v1562_v25, %v570_v27  ;;  %v1660_v30 = vpop.f32.mrf.mxu0 }
  0xe4   : > { %v1666_v31 = vpop.f32.mrf.mxu1  ;;  %v798_v32 = vpack.c.bf16 %v525_v28, %v525_v28 }
  0xe5   : > { %v799_v33 = vpack.c.bf16 %v571_v29, %v571_v29  ;;  %v527_v34 = vpop.f32.mrf.mxu0  ;;  %v817_v36 = vld [vmem:[#allocation2] sm:$0xf] }
  0xe6   : > { %v573_v35 = vpop.f32.mrf.mxu1  ;;  %v818_v37 = vld [vmem:[#allocation2 + $0x4] sm:$0xf]  ;;  %803 = vst.msk [vmem:[#allocation2 + $0x8] sm:$0xf] %vm800_vm2, %v798_v32  ;;  %v830_v38 = vsel %vm825_vm3, %v817_v36, 0 }
  0xe7   : > { %804 = vst.msk [vmem:[#allocation2 + $0xc] sm:$0xf] %vm800_vm2, %v799_v33  ;;  %v876_v39 = vsel %vm825_vm3, %v818_v37, 0  ;;  %v1661_v40 = vpop.f32.mrf.mxu0  ;;  %1693 = vmatpush3.bf16.xpose.msra.mxu0 %v830_v38 }
  0xe8   : > { %v1667_v41 = vpop.f32.mrf.mxu1  ;;  %1699 = vmatpush3.bf16.xpose.msra.mxu1 %v876_v39  ;;  %1704 = vmatprep.subr.bf16.mxu0 %v1923_v1 }
  0xe9   : > { %1710 = vmatprep.subr.bf16.mxu1 %v1923_v1  ;;  %v652_v43 = vpop.f32.mrf.mxu0 }
  0xea   : > { %v653_v44 = vadd.f32 %v1571_v42, %v652_v43  ;;  %v698_v60 = vpop.f32.mrf.mxu1 }
  0xeb   : > { %v1672_v47 = vpop.f32.mrf.mxu0  ;;  %v699_v61 = vadd.f32 %v1572_v59, %v698_v60 }
  0xec   : > { %v805_v48 = vpack.c.bf16 %v653_v44, %v653_v44  ;;  %v1678_v62 = vpop.f32.mrf.mxu1 }
  0xed   : > { %v819_v49 = vld [vmem:[#allocation2 + $0x8] sm:$0xf]  ;;  %v655_v51 = vpop.f32.mrf.mxu0  ;;  %v806_v0 = vpack.c.bf16 %v699_v61, %v699_v61 }
  0xee   : > { %v820_v50 = vld [vmem:[#allocation2 + $0xc] sm:$0xf]  ;;  %1695 = vmatmul.mubr.msk.bf16.vlgmr.msra.gmra.mxu0 %vm825_vm3, %v813_v45  ;;  %v922_v52 = vsel %vm825_vm3, %v819_v49, 0  ;;  %809 = vst.msk [vmem:[#allocation3] sm:$0xf] %vm800_vm2, %v805_v48  ;;  %v701_v2 = vpop.f32.mrf.mxu1 }
  0xef   : > { %1701 = vmatmul.mubr.msk.bf16.vlgmr.msra.gmra.mxu1 %vm825_vm3, %v814_v46  ;;  %v968_v53 = vsel %vm825_vm3, %v820_v50, 0  ;;  %1705 = vmatpush3.bf16.xpose.msra.mxu0 %v922_v52  ;;  %v1673_v54 = vpop.f32.mrf.mxu0  ;;  %810 = vst.msk [vmem:[#allocation3 + $0x4] sm:$0xf] %vm800_vm2, %v806_v0 }
  0xf0   : > { %1711 = vmatpush3.bf16.xpose.msra.mxu1 %v968_v53  ;;  %1706 = vmatprep.mubr.msk.bf16.mxu0 %vm1924_vm0, %v1923_v1  ;;  %v1679_v5 = vpop.f32.mrf.mxu1 }
  0xf1   : > { %1712 = vmatprep.mubr.msk.bf16.mxu1 %vm1924_vm0, %v1923_v1  ;;  %1716 = vmatprep.subr.bf16.mxu0 %v1923_v1  ;;  %v744_v3 = vpop.f32.mrf.mxu0 }
  0xf2   : > { %1722 = vmatprep.subr.bf16.mxu1 %v1923_v1  ;;  %v745_v4 = vadd.f32 %v1573_v63, %v744_v3  ;;  %v790_v10 = vpop.f32.mrf.mxu1 }
  0xf3   : > { %v1684_v6 = vpop.f32.mrf.mxu0  ;;  %v791_v11 = vadd.f32 %v1574_v7, %v790_v10 }
  0xf4   : > { %v807_v8 = vpack.c.bf16 %v745_v4, %v745_v4  ;;  %v1690_v13 = vpop.f32.mrf.mxu1  ;;  %v1244_v4 = vld [vmem:[%s2266_s6] sm:$0xf]  ;;  %v1591_v6 = vld [vmem:[%s2266_s6 + $0x4] sm:$0xf] }
  0xf5   : > { %v821_v57 = vld [vmem:[#allocation3] sm:$0xf]  ;;  %v747_v9 = vpop.f32.mrf.mxu0  ;;  %v808_v14 = vpack.c.bf16 %v791_v11, %v791_v11  ;;  %v1298_v5 = vsel %vm1053_vm4, %v1244_v4, 0  ;;  %v1252_v7 = vsel %vm1053_vm4, %v1591_v6, 0 }
  0xf6   : > { %1707 = vmatmul.mubr.msk.bf16.vlgmr.msra.gmra.mxu0 %vm825_vm3, %v815_v55  ;;  %v1055_v58 = vsel %vm1053_vm4, %v821_v57, 0  ;;  %811 = vst.msk [vmem:[#allocation3 + $0x8] sm:$0xf] %vm800_vm2, %v807_v8  ;;  %v793_v15 = vpop.f32.mrf.mxu1  ;;  %v822_v17 = vld [vmem:[#allocation3 + $0x4] sm:$0xf] }
  0xf7   : > { %1713 = vmatmul.mubr.msk.bf16.vlgmr.msra.gmra.mxu1 %vm825_vm3, %v816_v56  ;;  %1717 = vmatpush3.bf16.msra.mxu0 %v1055_v58  ;;  %v1685_v12 = vpop.f32.mrf.mxu0  ;;  %812 = vst.msk [vmem:[#allocation3 + $0xc] sm:$0xf] %vm800_vm2, %v808_v14  ;;  %v1101_v18 = vsel %vm1053_vm4, %v822_v17, 0  ;;  %v1596_v14 = vld [vmem:[%s2266_s6 + $0xc] sm:$0xf] }
  0xf8   : > { %1718 = vmatprep.mubr.msk.bf16.mxu0 %vm1924_vm0, %v1923_v1  ;;  %1728 = vmatprep.subr.bf16.mxu0 %v1923_v1  ;;  %v1691_v16 = vpop.f32.mrf.mxu1 }
  0xf9   : > { %1724 = vmatprep.mubr.msk.bf16.mxu1 %vm1924_vm0, %v1923_v1  ;;  %1723 = vmatpush3.bf16.msra.mxu1 %v1101_v18  ;;  %v1397_v18 = vsel %vm1053_vm4, %v1596_v14, 0 }
  0xfa   : > { %1734 = vmatprep.subr.bf16.mxu1 %v1923_v1 }
  0xfd   : > { %v823_v52 = vld [vmem:[#allocation3 + $0x8] sm:$0xf] }
  0xfe   : > { %v1147_v55 = vsel %vm1053_vm4, %v823_v52, 0  ;;  %v824_v57 = vld [vmem:[#allocation3 + $0xc] sm:$0xf] }
  0xff   : > { %v1193_v60 = vsel %vm1053_vm4, %v824_v57, 0 }
 0x1ae   : > { %v866_v19 = vpop.f32.mrf.mxu0 }
 0x1af   : > { %v912_v20 = vpop.f32.mrf.mxu1  ;;  %v1010_v21 = vsel %vm825_vm3, %v866_v19, -inf }
 0x1b0   : > { %1011 = vmax.xlane.f32.xlu0 %v1010_v21  ;;  %v1696_v23 = vpop.f32.mrf.mxu0  ;;  %v1013_v24 = vsel %vm825_vm3, %v912_v20, -inf }
 0x1b1   : > { %v1702_v22 = vpop.f32.mrf.mxu1 }
 0x1b2   : > { %v869_v25 = vpop.f32.mrf.mxu0  ;;  %v1594_v22 = vld [vmem:[%s2266_s6 + $0x8] sm:$0xf] }
 0x1b3   : > { %v915_v26 = vpop.f32.mrf.mxu1 }
 0x1b4   : > { %1014 = vmax.xlane.f32.xlu0 %v1013_v24  ;;  %v1697_v28 = vpop.f32.mrf.mxu0 }
 0x1b5   : > { %v1703_v27 = vpop.f32.mrf.mxu1 }
 0x1b6   : > { %v958_v29 = vpop.f32.mrf.mxu0  ;;  %v1347_v27 = vsel %vm1053_vm4, %v1594_v22, 0 }
 0x1b7   : > { %v1004_v30 = vpop.f32.mrf.mxu1  ;;  %v1016_v31 = vsel %vm825_vm3, %v958_v29, -inf }
 0x1b8   : > { %1017 = vmax.xlane.f32.xlu1 %v1016_v31  ;;  %v1708_v32 = vpop.f32.mrf.mxu0  ;;  %v1019_v34 = vsel %vm825_vm3, %v1004_v30, -inf }
 0x1b9   : > { %v1714_v33 = vpop.f32.mrf.mxu1 }
 0x1ba   : > { %v961_v35 = vpop.f32.mrf.mxu0 }
 0x1bb   : > { %v1007_v36 = vpop.f32.mrf.mxu1 }
 0x1bc   : > { %1020 = vmax.xlane.f32.xlu1 %v1019_v34  ;;  %v1709_v37 = vpop.f32.mrf.mxu0 }
 0x1bd   : > { %v1715_v38 = vpop.f32.mrf.mxu1 }
 0x239   : > { %v1012_v39 = vpop.xlane.xlu0 %1011 }
 0x23a   : > { %v1022_v40 = vsub.f32 %v866_v19, %v1012_v39 }
 0x23c   : > { %v1026_v41 = vmul.f32 1.442695, %v1022_v40 }
 0x23d   : > { %v1015_v42 = vpop.xlane.xlu0 %1014 }
 0x23e   : > { %1829 = vpow2.f32 %v1026_v41  ;;  %v1023_v43 = vsub.f32 %v912_v20, %v1015_v42 }
 0x240   : > { %v1028_v44 = vmul.f32 1.442695, %v1023_v43 }
 0x241   : > { %v1018_v45 = vpop.xlane.xlu1 %1017 }
 0x242   : > { %1831 = vpow2.f32 %v1028_v44  ;;  %v1024_v46 = vsub.f32 %v958_v29, %v1018_v45 }
 0x244   : > { %v1030_v47 = vmul.f32 1.442695, %v1024_v46 }
 0x245   : > { %v1021_v48 = vpop.xlane.xlu1 %1020 }
 0x246   : > { %1833 = vpow2.f32 %v1030_v47  ;;  %v1025_v49 = vsub.f32 %v1004_v30, %v1021_v48 }
 0x248   : > { %v1032_v50 = vmul.f32 1.442695, %v1025_v49 }
 0x24a   : > { %1835 = vpow2.f32 %v1032_v50 }
 0x24b   : > { %v1830_v51 = vpop.eup %1829 }
 0x24c   : > { %v1034_v53 = vsel %vm825_vm3, %v1830_v51, 0.0  ;;  %v1046_v54 = vpack.c.bf16 %v1830_v51, %v1830_v51 }
 0x24d   : > { %1035 = vadd.xlane.f32.xlu1 %v1034_v53 }
 0x24e   : > { %1719 = vmatmul.mubr.msk.bf16.vlgmr.msra.gmra.mxu0 %vm825_vm3, %v1046_v54 }
 0x24f   : > { %v1832_v56 = vpop.eup %1831  ;;  %1729 = vmatpush3.bf16.msra.mxu0 %v1147_v55  ;;  %1730 = vmatprep.mubr.msk.bf16.mxu0 %vm1924_vm0, %v1923_v1  ;;  %v1598_v55 = vld [vmem:[%s2267_s7] ss:$0 sm:$0xff] }
 0x250   : > { %v1037_v58 = vsel %vm825_vm3, %v1832_v56, 0.0  ;;  %v1047_v59 = vpack.c.bf16 %v1832_v56, %v1832_v56  ;;  %1740 = vmatprep.subr.bf16.mxu0 %v1923_v1 }
 0x251   : > { %1038 = vadd.xlane.f32.xlu0 %v1037_v58 }
 0x252   : > { %1725 = vmatmul.mubr.msk.bf16.vlgmr.msra.gmra.mxu1 %vm825_vm3, %v1047_v59 }
 0x253   : > { %v1834_v61 = vpop.eup %1833  ;;  %1735 = vmatpush3.bf16.msra.mxu1 %v1193_v60  ;;  %1736 = vmatprep.mubr.msk.bf16.mxu1 %vm1924_vm0, %v1923_v1 }
 0x254   : > { %v1040_v62 = vsel %vm825_vm3, %v1834_v61, 0.0  ;;  %v1048_v63 = vpack.c.bf16 %v1834_v61, %v1834_v61  ;;  %1746 = vmatprep.subr.bf16.mxu1 %v1923_v1 }
 0x255   : > { %1041 = vadd.xlane.f32.xlu0 %v1040_v62 }
 0x256   : > { %1731 = vmatmul.mubr.msk.bf16.vlgmr.msra.gmra.mxu0 %vm825_vm3, %v1048_v63 }
 0x257   : > { %v1836_v0 = vpop.eup %1835  ;;  %1742 = vmatprep.mubr.msk.bf16.mxu0 %vm1924_vm0, %v1923_v1  ;;  %1741 = vmatpush3.bf16.msra.mxu0 %v1252_v7 }
 0x258   : > { %v1043_v2 = vsel %vm825_vm3, %v1836_v0, 0.0  ;;  %v1049_v3 = vpack.c.bf16 %v1836_v0, %v1836_v0  ;;  %1752 = vmatprep.subr.bf16.mxu0 %v1923_v1 }
 0x259   : > { %1044 = vadd.xlane.f32.xlu1 %v1043_v2 }
 0x25a   : > { %1737 = vmatmul.mubr.msk.bf16.vlgmr.msra.gmra.mxu1 %vm825_vm3, %v1049_v3 }
 0x25b   : > { %1748 = vmatprep.mubr.msk.bf16.mxu1 %vm1924_vm0, %v1923_v1  ;;  %1747 = vmatpush3.bf16.msra.mxu1 %v1298_v5 }
 0x25c   : > { %1758 = vmatprep.subr.bf16.mxu1 %v1923_v1 }
 0x2d6   : > { %v1036_v8 = vpop.xlane.xlu1 %1035 }
 0x2d7   : > { %1837 = vrcp.f32 %v1036_v8 }
 0x2da   : > { %v1039_v9 = vpop.xlane.xlu0 %1038 }
 0x2db   : > { %1839 = vrcp.f32 %v1039_v9 }
 0x2de   : > { %v1042_v10 = vpop.xlane.xlu0 %1041 }
 0x2df   : > { %1841 = vrcp.f32 %v1042_v10 }
 0x2e2   : > { %v1045_v11 = vpop.xlane.xlu1 %1044 }
 0x2e3   : > { %1843 = vrcp.f32 %v1045_v11 }
 0x2e4   : > { %v1838_v12 = vpop.eup %1837 }
 0x2e8   : > { %v1840_v19 = vpop.eup %1839 }
 0x2ec   : > { %v1842_v30 = vpop.eup %1841 }
 0x2f0   : > { %v1844_v34 = vpop.eup %1843 }
 0x30e   : > { %v1091_v13 = vpop.f32.mrf.mxu0 }
 0x30f   : > { %v1239_v15 = vmul.f32 %v1838_v12, %v1091_v13 }
 0x310   : > { %v1720_v16 = vpop.f32.mrf.mxu0 }
 0x311   : > { %v1243_v17 = vpack.c.bf16 %v1239_v15, %v1239_v15 }
 0x312   : > { %v1094_v20 = vpop.f32.mrf.mxu0  ;;  %v1137_v21 = vpop.f32.mrf.mxu1 }
 0x313   : > { %v1240_v23 = vmul.f32 %v1840_v19, %v1137_v21  ;;  %1749 = vmatmul.mubr.msk.bf16.vlgmr.msra.gmra.mxu1 %vm825_vm3, %v1243_v17 }
 0x314   : > { %v1721_v24 = vpop.f32.mrf.mxu0  ;;  %v1726_v25 = vpop.f32.mrf.mxu1  ;;  %1759 = vmatpush3.bf16.msra.mxu1 %v1397_v18  ;;  %1760 = vmatprep.mubr.msk.bf16.mxu1 %vm1924_vm0, %v1923_v1 }
 0x315   : > { %v1245_v26 = vpack.c.bf16 %v1240_v23, %v1240_v23 }
 0x316   : > { %v1140_v28 = vpop.f32.mrf.mxu1  ;;  %v1183_v29 = vpop.f32.mrf.mxu0 }
 0x317   : > { %1743 = vmatmul.mubr.msk.bf16.vlgmr.msra.gmra.mxu0 %vm825_vm3, %v1245_v26  ;;  %v1241_v33 = vmul.f32 %v1842_v30, %v1183_v29 }
 0x318   : > { %v1727_v31 = vpop.f32.mrf.mxu1  ;;  %v1732_v32 = vpop.f32.mrf.mxu0  ;;  %1753 = vmatpush3.bf16.msra.mxu0 %v1347_v27  ;;  %1754 = vmatprep.mubr.msk.bf16.mxu0 %vm1924_vm0, %v1923_v1 }
 0x319   : > { %v1340_v40 = vpack.c.bf16 %v1241_v33, %v1241_v33 }
 0x31a   : > { %v1186_v35 = vpop.f32.mrf.mxu0  ;;  %v1229_v36 = vpop.f32.mrf.mxu1 }
 0x31b   : > { %v1242_v37 = vmul.f32 %v1844_v34, %v1229_v36 }
 0x31c   : > { %v1733_v38 = vpop.f32.mrf.mxu0  ;;  %v1738_v39 = vpop.f32.mrf.mxu1 }
 0x31d   : > { %v1390_v41 = vpack.c.bf16 %v1242_v37, %v1242_v37 }
 0x31e   : > { %v1232_v42 = vpop.f32.mrf.mxu1 }
 0x31f   : > { %1755 = vmatmul.mubr.msk.bf16.vlgmr.msra.gmra.mxu0 %vm825_vm3, %v1340_v40  ;;  %1761 = vmatmul.mubr.msk.bf16.vlgmr.msra.gmra.mxu1 %vm825_vm3, %v1390_v41 }
 0x320   : > { %v1739_v43 = vpop.f32.mrf.mxu1 }
 0x3d3   : > { %v1334_v44 = vpop.f32.mrf.mxu1 }
 0x3d5   : > { %v1750_v45 = vpop.f32.mrf.mxu1 }
 0x3d7   : > { %v1288_v1 = vpop.f32.mrf.mxu0  ;;  %v1337_v46 = vpop.f32.mrf.mxu1 }
 0x3d8   : > { %v1335_v51 = vadd.f32 %v1334_v44, %v1288_v1 }
 0x3d9   : > { %v1744_v47 = vpop.f32.mrf.mxu0  ;;  %v1751_v48 = vpop.f32.mrf.mxu1 }
 0x3db   : > { %v1291_v49 = vpop.f32.mrf.mxu0 }
 0x3dd   : > { %v1745_v50 = vpop.f32.mrf.mxu0 }
 0x3df   : > { %v1383_v52 = vpop.f32.mrf.mxu0  ;;  %v1433_v53 = vpop.f32.mrf.mxu1 }
 0x3e0   : > { %v1389_v54 = vadd.f32 %v1383_v52, %v1335_v51 }
 0x3e1   : > { %v1756_v56 = vpop.f32.mrf.mxu0  ;;  %v1762_v57 = vpop.f32.mrf.mxu1 }
 0x3e2   : > { %v1439_v58 = vadd.f32 %v1433_v53, %v1389_v54 }
 0x3e3   : > { %v1386_v59 = vpop.f32.mrf.mxu0  ;;  %v1436_v60 = vpop.f32.mrf.mxu1 }
 0x3e4   : > { %v1447_v61 = vadd.f32 %v1598_v55, %v1439_v58 }
 0x3e5   : > { %v1757_v62 = vpop.f32.mrf.mxu0  ;;  %v1763_v63 = vpop.f32.mrf.mxu1 }
 0x3e6   : > { %1448 = vst [vmem:[%s333_s11] sm:$0xff] %v1447_v61 }
 0x3e7   : > { %1858 = shalt.err (!%p1855_p5)
}
 0x3e8   : > { %s1859_s25 = scalar_lea.hbm %s2214_s23, 128  ;;  %s1863_s11 = scalar_lea.hbm %s2268_s8, 256 }
 0x3e9   : > { %p1860_p6 = scmp.ne.s32.totalorder %s2214_s23, %s1859_s25  ;;  %p1864_p10 = scmp.lt.s32.totalorder %s2214_s23, %s2268_s8 }
 0x3ea   : > { %p1865_p11 = scmp.lt.s32.totalorder %s1863_s11, %s1859_s25 }
 0x3eb   : > { %p1861_p7 = pnand %p1860_p6, %p2011_p4 }
 0x3ec   : > { %p1866_p12 = por %p1865_p11, %p1864_p10 }
 0x3ed   : > { %p1862_p9 = pneg %p1861_p7 }
 0x3ef   : > { %p1867_p13 = pnand %p1866_p12, %p1862_p9 }
 0x3f1   : > { %1870 = shalt.err (!%p1867_p13)
}
 0x3f2   : > { %1764 = dma.vmem_to_hbm [thread:$0]  (%p2011_p4), %s2216_s12, 128, %s2214_s23, %s1450_s30  }
 0x3f3 PF: > { %p1770_p0 = scmp.ge.s32.totalorder %s1921_s10, 2  ;;  %s1476_s19 = sand.u32 1, %s1901_s27  }
 0x3f4   : > { %s1477_s20 = scalar_lea.sflag [#allocation5], %s1476_s19 }
 0x3f5   : > { %p1767_p1 = pnand %p1770_p0, %p2018_p8 }
 0x3f7   : > { %p1768_p2 = pneg %p1767_p1 }
 0x3f9   : > { %1896 = dma.done.wait (%p1768_p2), %s1477_s20, 128  }
 0x3fa   : > { %1898 = vsyncadd (%p1768_p2), %s1477_s20, 4294967168  ;;  %s21_s10 = sadd.s32 1, %s1921_s10   ;;  %s2271_s27 = smov %s1905_s28 }
 0x3fb   : > { %p18_p3 = scmp.ge.s32.totalorder %s21_s10, 4   ;;  %s2272_s28 = smov %s1909_s29 }
 0x3fc   : > { %s2273_s29 = smov %s2024_s18  ;;  %s2274_s30 = smov %s1917_s9 }
 0x3fd   : > { %s2275_s9 = smov %s2277_s13  ;;  %20 = sbr.rel (!%p18_p3) target bundleno = 4 (0x4), region = 97 }
 0x402   :  { %1482 = vsyncpa [#allocation5], 1 }
 0x403   :  { %1484 = vsyncpa [#allocation5 + $0x1], 1 }

</bundles_post_ra>
